<compile_context>
chip_gen: v7x
topology: tpu7x:2x2x1
jax: 0.10.0
libtpu: 0.0.40
codegen_flags: <defaults>
</compile_context>

<pallas_src>
import functools

import jax
import jax.numpy as jnp
from jax.experimental import pallas as pl
from jax.experimental.pallas import tpu as pltpu

_VMEM_LIMIT_BYTES = 48 * 1024 * 1024   # <= 64 MiB physical on v7x, fine on v5e/v6e


def _round_up(x, m):
    return (x + m - 1) // m * m


# ---------------------------------------------------------------------------
# Tiled matmul + bias kernel (vocab projection)
# ---------------------------------------------------------------------------
def _matmul_bias_kernel(x_ref, w_ref, b_ref, o_ref):
    o_ref[...] = (jnp.dot(x_ref[...], w_ref[...],
                          preferred_element_type=jnp.float32)
                  + b_ref[...]).astype(o_ref.dtype)


def matmul_bias(x, w, b, *, out_dtype=jnp.float32, tm_max=256, tn_max=512):
    """(M, K) @ (K, N) + (1, N). M/N padded to tile multiples; K resident."""
    M, K = x.shape
    _, N = w.shape
    tm = min(tm_max, _round_up(M, 8))       # sublane granularity
    tn = min(tn_max, _round_up(N, 128))     # lane-dense, fixed tile for big N
    Mp = _round_up(M, tm)
    Np = _round_up(N, tn)
    if Mp != M:
        x = jnp.pad(x, ((0, Mp - M), (0, 0)))
    if Np != N:
        w = jnp.pad(w, ((0, 0), (0, Np - N)))
        b = jnp.pad(b, ((0, 0), (0, Np - N)))

    out = pl.pallas_call(
        _matmul_bias_kernel,
        out_shape=jax.ShapeDtypeStruct((Mp, Np), out_dtype),
        grid_spec=pltpu.PrefetchScalarGridSpec(
            num_scalar_prefetch=0,
            grid=(Mp // tm, Np // tn),
            in_specs=[
                pl.BlockSpec((tm, K), lambda i, j: (i, 0)),
                pl.BlockSpec((K, tn), lambda i, j: (0, j)),
                pl.BlockSpec((1, tn), lambda i, j: (0, j)),
            ],
            out_specs=pl.BlockSpec((tm, tn), lambda i, j: (i, j)),
        ),
        compiler_params=pltpu.CompilerParams(
            dimension_semantics=("parallel", "parallel"),
            vmem_limit_bytes=_VMEM_LIMIT_BYTES),
    )(x, w, b)
    if Mp != M or Np != N:
        out = out[:M, :N]
    return out


# ---------------------------------------------------------------------------
# LSTM recurrence with fused input projection, T tiled on the grid
# ---------------------------------------------------------------------------
def _lstm_recurrence_kernel(x_ref, wih_ref, b_ref, whh_ref, h_all_ref,
                            gx_scr, h_scr, c_scr):
    bp, H = h_scr.shape
    tt = h_all_ref.shape[0]

    # Zero initial state only on the first T-chunk; h/c scratch carries
    # across grid steps (grid axis is "arbitrary" == sequential).
    @pl.when(pl.program_id(0) == 0)
    def _():
        h_scr[...] = jnp.zeros_like(h_scr)
        c_scr[...] = jnp.zeros_like(c_scr)

    # Fused input projection for this chunk: one (TT*Bp, E) @ (E, 4H) MXU
    # matmul -- no f32 gates_x HBM round trip between kernels.
    gx_scr[...] = (jnp.dot(x_ref[...], wih_ref[...],
                           preferred_element_type=jnp.float32)
                   + b_ref[...])

    def step(t, carry):
        row = pl.multiple_of(t * bp, bp)
        # Only h @ W_hh^T is on the serial path; h is already bf16 in scratch.
        gates = gx_scr[pl.ds(row, bp), :] + jnp.dot(
            h_scr[...], whh_ref[...], preferred_element_type=jnp.float32)
        i_g = jax.nn.sigmoid(gates[:, 0 * H:1 * H])
        f_g = jax.nn.sigmoid(gates[:, 1 * H:2 * H])
        g_g = jnp.tanh(gates[:, 2 * H:3 * H])
        o_g = jax.nn.sigmoid(gates[:, 3 * H:4 * H])
        c_new = f_g * c_scr[...] + i_g * g_g
        h_new = (o_g * jnp.tanh(c_new)).astype(jnp.bfloat16)
        c_scr[...] = c_new
        h_scr[...] = h_new          # bf16 copy fed to next step's dot
        h_all_ref[t] = h_new        # bf16 output, leading-dim store
        return carry

    # TT is small (<= 8) by construction, so full unroll stays bounded.
    jax.lax.fori_loop(0, tt, step, 0, unroll=True)


def _lstm_recurrence_pallas(x_tm, wih_t, b, whh_t, *, tt, bp, hidden):
    """x_tm: (Tp*Bp, E) bf16 time-major; returns h_all (Tp, Bp, H) bf16."""
    TB, E = x_tm.shape
    G = wih_t.shape[1]            # 4H
    H = hidden
    n_chunks = TB // (tt * bp)
    return pl.pallas_call(
        _lstm_recurrence_kernel,
        out_shape=jax.ShapeDtypeStruct((n_chunks * tt, bp, H), jnp.bfloat16),
        grid_spec=pltpu.PrefetchScalarGridSpec(
            num_scalar_prefetch=0,
            grid=(n_chunks,),
            in_specs=[
                pl.BlockSpec((tt * bp, E), lambda i: (i, 0)),   # streams
                pl.BlockSpec((E, G), lambda i: (0, 0)),         # resident
                pl.BlockSpec((1, G), lambda i: (0, 0)),         # resident
                pl.BlockSpec((H, G), lambda i: (0, 0)),         # resident
            ],
            out_specs=pl.BlockSpec((tt, bp, H), lambda i: (i, 0, 0)),
            scratch_shapes=[
                pltpu.VMEM((tt * bp, G), jnp.float32),   # chunk gate pre-acts
                pltpu.VMEM((bp, H), jnp.bfloat16),       # h state (bf16 for MXU)
                pltpu.VMEM((bp, H), jnp.float32),        # c state (f32)
            ],
        ),
        compiler_params=pltpu.CompilerParams(
            dimension_semantics=("arbitrary",),    # recurrence => sequential
            vmem_limit_bytes=_VMEM_LIMIT_BYTES),
    )(x_tm, wih_t, b, whh_t)


# ---------------------------------------------------------------------------
# DecoderRNN forward (embedding/concat glue in XLA, hot path in Pallas)
# ---------------------------------------------------------------------------
def decoder_rnn_forward(params, features, captions, *, tt=8):
    """features: (B, E) f32, captions: (B, Tc) int32 -> (B, Tc, V) f32 logits."""
    emb = params["embedding"]                      # (V, E)
    captions = captions[:, :-1]                    # drop last token
    cap_emb = jnp.take(emb, captions, axis=0)      # (B, Tc-1, E)
    x = jnp.concatenate([features[:, None, :], cap_emb], axis=1)  # (B, T, E)

    B, T, E = x.shape
    H = params["w_hh"].shape[1]
    V = params["w_lin"].shape[0]
    assert E % 128 == 0 and H % 128 == 0, (
        "embed_size and hidden_size must be multiples of 128 (lane width)")

    Bp = _round_up(B, 8)       # f32/bf16 sublane granularity for the state
    Tp = _round_up(T, tt)      # pad time so the chunked grid divides evenly

    # Time-major, padded, flattened to (Tp*Bp, E) bf16. Padded time steps run
    # after all real steps (harmless); padded batch rows are sliced away.
    x_tm = jnp.transpose(x, (1, 0, 2))
    x_tm = jnp.pad(x_tm, ((0, Tp - T), (0, Bp - B), (0, 0)))
    x_tm = x_tm.reshape(Tp * Bp, E).astype(jnp.bfloat16)

    # bf16 matmul operands; biases / accumulations stay f32.
    wih_t = params["w_ih"].T.astype(jnp.bfloat16)                 # (E, 4H)
    whh_t = params["w_hh"].T.astype(jnp.bfloat16)                 # (H, 4H)
    b = (params["b_ih"] + params["b_hh"]).reshape(1, -1).astype(jnp.float32)
    wl_t = params["w_lin"].T.astype(jnp.bfloat16)                 # (H, V)
    bl = params["b_lin"].reshape(1, -1).astype(jnp.float32)       # (1, V)

    # 1+2) Fused input projection + serial LSTM recurrence, T-chunked.
    h_all = _lstm_recurrence_pallas(x_tm, wih_t, b, whh_t,
                                    tt=tt, bp=Bp, hidden=H)       # (Tp,Bp,H) bf16

    # 3) Vocab projection on un-padded, batch-first h (small bf16 transpose);
    #    logits come out directly in (B, T, V).
    h_bt = jnp.transpose(h_all[:T, :B, :], (1, 0, 2)).reshape(B * T, H)
    logits = matmul_bias(h_bt, wl_t, bl)                          # (B*T, V) f32
    return logits.reshape(B, T, V)


# ---------------------------------------------------------------------------
# Pure-JAX f32 reference (lax.scan LSTM) for a correctness check
# ---------------------------------------------------------------------------
def decoder_rnn_reference(params, features, captions):
    emb = params["embedding"]
    captions = captions[:, :-1]
    cap_emb = jnp.take(emb, captions, axis=0)
    x = jnp.concatenate([features[:, None, :], cap_emb], axis=1)  # (B, T, E)

    H = params["w_hh"].shape[1]
    w_ih, w_hh = params["w_ih"], params["w_hh"]
    b = params["b_ih"] + params["b_hh"]

    def step(carry, x_t):
        h, c = carry
        gates = x_t @ w_ih.T + h @ w_hh.T + b
        i = jax.nn.sigmoid(gates[:, 0 * H:1 * H])
        f = jax.nn.sigmoid(gates[:, 1 * H:2 * H])
        g = jnp.tanh(gates[:, 2 * H:3 * H])
        o = jax.nn.sigmoid(gates[:, 3 * H:4 * H])
        c_new = f * c + i * g
        h_new = o * jnp.tanh(c_new)
        return (h_new, c_new), h_new

    B = x.shape[0]
    h0 = jnp.zeros((B, H), jnp.float32)
    c0 = jnp.zeros((B, H), jnp.float32)
    _, hs = jax.lax.scan(step, (h0, c0), jnp.transpose(x, (1, 0, 2)))
    hs = jnp.transpose(hs, (1, 0, 2))                              # (B, T, H)
    return hs @ params["w_lin"].T + params["b_lin"]


# ---------------------------------------------------------------------------
def make_params(key, vocab_size, embed_size, hidden_size):
    ks = jax.random.split(key, 7)
    s = 0.05
    return {
        "embedding": s * jax.random.normal(ks[0], (vocab_size, embed_size), jnp.float32),
        "w_ih": s * jax.random.normal(ks[1], (4 * hidden_size, embed_size), jnp.float32),
        "w_hh": s * jax.random.normal(ks[2], (4 * hidden_size, hidden_size), jnp.float32),
        "b_ih": s * jax.random.normal(ks[3], (4 * hidden_size,), jnp.float32),
        "b_hh": s * jax.random.normal(ks[4], (4 * hidden_size,), jnp.float32),
        "w_lin": s * jax.random.normal(ks[5], (vocab_size, hidden_size), jnp.float32),
        "b_lin": s * jax.random.normal(ks[6], (vocab_size,), jnp.float32),
    }


if __name__ == "__main__":
    # Small shapes consistent with DecoderRNN(embed, hidden, vocab, 1).
    # T=9 with TT=8 exercises the multi-chunk carry; V=1000 exercises the
    # padded / multi-tile vocab projection.
    B, Tc = 4, 9
    EMBED, HIDDEN, VOCAB = 128, 128, 1000

    key = jax.random.PRNGKey(0)
    kp, kf, kc = jax.random.split(key, 3)

    params = make_params(kp, VOCAB, EMBED, HIDDEN)
    features = jax.random.normal(kf, (B, EMBED), jnp.float32)
    captions = jax.random.randint(kc, (B, Tc), 0, VOCAB, dtype=jnp.int32)

    fwd = jax.jit(functools.partial(decoder_rnn_forward, params))
    logits = fwd(features, captions)
    jax.block_until_ready(logits)

    assert logits.shape == (B, Tc, VOCAB), logits.shape

    ref = decoder_rnn_reference(params, features, captions)
    # bf16 matmul operands (and bf16 h carried through the recurrence) with
    # f32 accumulation: ~few e-3 max error at these scales / T=9.
    err = float(jnp.max(jnp.abs(logits - ref)))
    assert jnp.allclose(logits, ref, rtol=2e-2, atol=2e-2), f"mismatch vs reference: {err}"

    # TODO(synk): DecoderRNN.sample() (greedy decode while-loop) is not part
    # of forward() and is not implemented here.
    print("KERNEL_OK")
</pallas_src>

<mosaic_0001>
module attributes {stable_mosaic.version = 11 : i64} {
  func.func @_lstm_recurrence_kernel(%arg0: i32, %arg1: memref<64x128xbf16, #tpu.memory_space<vmem>>, %arg2: memref<128x512xbf16, #tpu.memory_space<vmem>>, %arg3: memref<1x512xf32, #tpu.memory_space<vmem>>, %arg4: memref<128x512xbf16, #tpu.memory_space<vmem>>, %arg5: memref<8x8x128xbf16, #tpu.memory_space<vmem>>, %arg6: memref<64x512xf32, #tpu.memory_space<vmem>>, %arg7: memref<8x128xbf16, #tpu.memory_space<vmem>>, %arg8: memref<8x128xf32, #tpu.memory_space<vmem>>) attributes {dimension_semantics = [#tpu.dimension_semantics<arbitrary>], iteration_bounds = array<i64: 2>, scalar_prefetch = 0 : i64, scratch_operands = 3 : i64, tpu.core_type = #tpu.core_type<tc>, window_params = [{transform_indices = @transform_0, window_bounds = array<i64: 64, 128>}, {pipeline_mode = #tpu.pipeline_mode<synchronous>, transform_indices = @transform_1, window_bounds = array<i64: 128, 512>}, {pipeline_mode = #tpu.pipeline_mode<synchronous>, transform_indices = @transform_2, window_bounds = array<i64: 1, 512>}, {pipeline_mode = #tpu.pipeline_mode<synchronous>, transform_indices = @transform_3, window_bounds = array<i64: 128, 512>}, {transform_indices = @transform_4, window_bounds = array<i64: 8, 8, 128>}]} {
    %c0_i32 = arith.constant 0 : i32
    %0 = arith.cmpi eq, %arg0, %c0_i32 : i32
    %1 = arith.extui %0 : i1 to i32
    %c0_i32_0 = arith.constant 0 : i32
    %2 = arith.cmpi ne, %1, %c0_i32_0 : i32
    scf.if %2 {
      %cst_153 = arith.constant 0.000000e+00 : bf16
      %338 = vector.broadcast %cst_153 : bf16 to vector<8x128xbf16>
      %c0_154 = arith.constant 0 : index
      %c0_155 = arith.constant 0 : index
      %339 = vector.load %arg7[%c0_154, %c0_155] : memref<8x128xbf16, #tpu.memory_space<vmem>>, vector<8x128xbf16>
      tpu.vector_store %arg7[%c0_154, %c0_155], %338 {strides = array<i32>} : memref<8x128xbf16, #tpu.memory_space<vmem>>, vector<8x128xbf16>,
      %cst_156 = arith.constant 0.000000e+00 : f32
      %340 = vector.broadcast %cst_156 : f32 to vector<8x128xf32>
      %c0_157 = arith.constant 0 : index
      %c0_158 = arith.constant 0 : index
      %341 = vector.load %arg8[%c0_157, %c0_158] : memref<8x128xf32, #tpu.memory_space<vmem>>, vector<8x128xf32>
      tpu.vector_store %arg8[%c0_157, %c0_158], %340 {strides = array<i32>} : memref<8x128xf32, #tpu.memory_space<vmem>>, vector<8x128xf32>,
    } else {
    }
    %c0 = arith.constant 0 : index
    %c0_1 = arith.constant 0 : index
    %3 = vector.load %arg1[%c0, %c0_1] : memref<64x128xbf16, #tpu.memory_space<vmem>>, vector<64x128xbf16>
    %c0_2 = arith.constant 0 : index
    %c0_3 = arith.constant 0 : index
    %4 = vector.load %arg2[%c0_2, %c0_3] : memref<128x512xbf16, #tpu.memory_space<vmem>>, vector<128x512xbf16>
    %cst = arith.constant dense<0.000000e+00> : vector<64x512xf32>
    %5 = tpu.matmul %3, %4, %cst {dimension_numbers = #tpu.dot_dimension_numbers<[1], [0], [0], [1], [0, 0, 1, 1], [], []>} : vector<64x128xbf16>, vector<128x512xbf16>, vector<64x512xf32> -> vector<64x512xf32>
    %c0_4 = arith.constant 0 : index
    %c0_5 = arith.constant 0 : index
    %6 = vector.load %arg3[%c0_4, %c0_5] : memref<1x512xf32, #tpu.memory_space<vmem>>, vector<1x512xf32>
    %7 = vector.broadcast %6 : vector<1x512xf32> to vector<64x512xf32>
    %8 = arith.addf %5, %7 : vector<64x512xf32>
    %c0_6 = arith.constant 0 : index
    %c0_7 = arith.constant 0 : index
    %9 = vector.load %arg6[%c0_6, %c0_7] : memref<64x512xf32, #tpu.memory_space<vmem>>, vector<64x512xf32>
    tpu.vector_store %arg6[%c0_6, %c0_7], %8 {strides = array<i32>} : memref<64x512xf32, #tpu.memory_space<vmem>>, vector<64x512xf32>,
    %c0_i32_8 = arith.constant 0 : i32
    %c8_i32 = arith.constant 8 : i32
    %10 = arith.muli %c0_i32_8, %c8_i32 : i32
    %11 = tpu.assume_multiple %10, 8 : i32
    %12 = arith.index_cast %11 : i32 to index
    %c0_9 = arith.constant 0 : index
    %13 = vector.load %arg6[%12, %c0_9] : memref<64x512xf32, #tpu.memory_space<vmem>>, vector<8x512xf32>
    %c0_10 = arith.constant 0 : index
    %c0_11 = arith.constant 0 : index
    %14 = vector.load %arg7[%c0_10, %c0_11] : memref<8x128xbf16, #tpu.memory_space<vmem>>, vector<8x128xbf16>
    %c0_12 = arith.constant 0 : index
    %c0_13 = arith.constant 0 : index
    %15 = vector.load %arg4[%c0_12, %c0_13] : memref<128x512xbf16, #tpu.memory_space<vmem>>, vector<128x512xbf16>
    %cst_14 = arith.constant dense<0.000000e+00> : vector<8x512xf32>
    %16 = tpu.matmul %14, %15, %cst_14 {dimension_numbers = #tpu.dot_dimension_numbers<[1], [0], [0], [1], [0, 0, 1, 1], [], []>} : vector<8x128xbf16>, vector<128x512xbf16>, vector<8x512xf32> -> vector<8x512xf32>
    %17 = arith.addf %13, %16 : vector<8x512xf32>
    %18 = vector.extract_strided_slice %17 {offsets = [0, 0], sizes = [8, 128], strides = [1, 1]} : vector<8x512xf32> to vector<8x128xf32>
    %19 = arith.negf %18 : vector<8x128xf32>
    %20 = math.exp %19 : vector<8x128xf32>
    %cst_15 = arith.constant 1.000000e+00 : f32
    %21 = vector.broadcast %cst_15 : f32 to vector<8x128xf32>
    %22 = arith.addf %21, %20 : vector<8x128xf32>
    %23 = arith.divf %21, %22 : vector<8x128xf32>
    %24 = vector.extract_strided_slice %17 {offsets = [0, 128], sizes = [8, 128], strides = [1, 1]} : vector<8x512xf32> to vector<8x128xf32>
    %25 = arith.negf %24 : vector<8x128xf32>
    %26 = math.exp %25 : vector<8x128xf32>
    %cst_16 = arith.constant 1.000000e+00 : f32
    %27 = vector.broadcast %cst_16 : f32 to vector<8x128xf32>
    %28 = arith.addf %27, %26 : vector<8x128xf32>
    %29 = arith.divf %27, %28 : vector<8x128xf32>
    %30 = vector.extract_strided_slice %17 {offsets = [0, 256], sizes = [8, 128], strides = [1, 1]} : vector<8x512xf32> to vector<8x128xf32>
    %31 = math.tanh %30 : vector<8x128xf32>
    %32 = vector.extract_strided_slice %17 {offsets = [0, 384], sizes = [8, 128], strides = [1, 1]} : vector<8x512xf32> to vector<8x128xf32>
    %33 = arith.negf %32 : vector<8x128xf32>
    %34 = math.exp %33 : vector<8x128xf32>
    %cst_17 = arith.constant 1.000000e+00 : f32
    %35 = vector.broadcast %cst_17 : f32 to vector<8x128xf32>
    %36 = arith.addf %35, %34 : vector<8x128xf32>
    %37 = arith.divf %35, %36 : vector<8x128xf32>
    %c0_18 = arith.constant 0 : index
    %c0_19 = arith.constant 0 : index
    %38 = vector.load %arg8[%c0_18, %c0_19] : memref<8x128xf32, #tpu.memory_space<vmem>>, vector<8x128xf32>
    %39 = arith.mulf %29, %38 : vector<8x128xf32>
    %40 = arith.mulf %23, %31 : vector<8x128xf32>
    %41 = arith.addf %39, %40 : vector<8x128xf32>
    %42 = math.tanh %41 : vector<8x128xf32>
    %43 = arith.mulf %37, %42 : vector<8x128xf32>
    %44 = arith.truncf %43 : vector<8x128xf32> to vector<8x128xbf16>
    %c0_20 = arith.constant 0 : index
    %c0_21 = arith.constant 0 : index
    %45 = vector.load %arg8[%c0_20, %c0_21] : memref<8x128xf32, #tpu.memory_space<vmem>>, vector<8x128xf32>
    tpu.vector_store %arg8[%c0_20, %c0_21], %41 {strides = array<i32>} : memref<8x128xf32, #tpu.memory_space<vmem>>, vector<8x128xf32>,
    %c0_22 = arith.constant 0 : index
    %c0_23 = arith.constant 0 : index
    %46 = vector.load %arg7[%c0_22, %c0_23] : memref<8x128xbf16, #tpu.memory_space<vmem>>, vector<8x128xbf16>
    tpu.vector_store %arg7[%c0_22, %c0_23], %44 {strides = array<i32>} : memref<8x128xbf16, #tpu.memory_space<vmem>>, vector<8x128xbf16>,
    %47 = arith.index_cast %c0_i32_8 : i32 to index
    %c0_24 = arith.constant 0 : index
    %c0_25 = arith.constant 0 : index
    %48 = vector.load %arg5[%47, %c0_24, %c0_25] : memref<8x8x128xbf16, #tpu.memory_space<vmem>>, vector<1x8x128xbf16>
    %49 = vector.shape_cast %48 : vector<1x8x128xbf16> to vector<8x128xbf16>
    %50 = vector.shape_cast %44 : vector<8x128xbf16> to vector<1x8x128xbf16>
    tpu.vector_store %arg5[%47, %c0_24, %c0_25], %50 {strides = array<i32>} : memref<8x8x128xbf16, #tpu.memory_space<vmem>>, vector<1x8x128xbf16>,
    %c1_i32 = arith.constant 1 : i32
    %c8_i32_26 = arith.constant 8 : i32
    %51 = arith.muli %c1_i32, %c8_i32_26 : i32
    %52 = tpu.assume_multiple %51, 8 : i32
    %53 = arith.index_cast %52 : i32 to index
    %c0_27 = arith.constant 0 : index
    %54 = vector.load %arg6[%53, %c0_27] : memref<64x512xf32, #tpu.memory_space<vmem>>, vector<8x512xf32>
    %c0_28 = arith.constant 0 : index
    %c0_29 = arith.constant 0 : index
    %55 = vector.load %arg7[%c0_28, %c0_29] : memref<8x128xbf16, #tpu.memory_space<vmem>>, vector<8x128xbf16>
    %c0_30 = arith.constant 0 : index
    %c0_31 = arith.constant 0 : index
    %56 = vector.load %arg4[%c0_30, %c0_31] : memref<128x512xbf16, #tpu.memory_space<vmem>>, vector<128x512xbf16>
    %cst_32 = arith.constant dense<0.000000e+00> : vector<8x512xf32>
    %57 = tpu.matmul %55, %56, %cst_32 {dimension_numbers = #tpu.dot_dimension_numbers<[1], [0], [0], [1], [0, 0, 1, 1], [], []>} : vector<8x128xbf16>, vector<128x512xbf16>, vector<8x512xf32> -> vector<8x512xf32>
    %58 = arith.addf %54, %57 : vector<8x512xf32>
    %59 = vector.extract_strided_slice %58 {offsets = [0, 0], sizes = [8, 128], strides = [1, 1]} : vector<8x512xf32> to vector<8x128xf32>
    %60 = arith.negf %59 : vector<8x128xf32>
    %61 = math.exp %60 : vector<8x128xf32>
    %cst_33 = arith.constant 1.000000e+00 : f32
    %62 = vector.broadcast %cst_33 : f32 to vector<8x128xf32>
    %63 = arith.addf %62, %61 : vector<8x128xf32>
    %64 = arith.divf %62, %63 : vector<8x128xf32>
    %65 = vector.extract_strided_slice %58 {offsets = [0, 128], sizes = [8, 128], strides = [1, 1]} : vector<8x512xf32> to vector<8x128xf32>
    %66 = arith.negf %65 : vector<8x128xf32>
    %67 = math.exp %66 : vector<8x128xf32>
    %cst_34 = arith.constant 1.000000e+00 : f32
    %68 = vector.broadcast %cst_34 : f32 to vector<8x128xf32>
    %69 = arith.addf %68, %67 : vector<8x128xf32>
    %70 = arith.divf %68, %69 : vector<8x128xf32>
    %71 = vector.extract_strided_slice %58 {offsets = [0, 256], sizes = [8, 128], strides = [1, 1]} : vector<8x512xf32> to vector<8x128xf32>
    %72 = math.tanh %71 : vector<8x128xf32>
    %73 = vector.extract_strided_slice %58 {offsets = [0, 384], sizes = [8, 128], strides = [1, 1]} : vector<8x512xf32> to vector<8x128xf32>
    %74 = arith.negf %73 : vector<8x128xf32>
    %75 = math.exp %74 : vector<8x128xf32>
    %cst_35 = arith.constant 1.000000e+00 : f32
    %76 = vector.broadcast %cst_35 : f32 to vector<8x128xf32>
    %77 = arith.addf %76, %75 : vector<8x128xf32>
    %78 = arith.divf %76, %77 : vector<8x128xf32>
    %c0_36 = arith.constant 0 : index
    %c0_37 = arith.constant 0 : index
    %79 = vector.load %arg8[%c0_36, %c0_37] : memref<8x128xf32, #tpu.memory_space<vmem>>, vector<8x128xf32>
    %80 = arith.mulf %70, %79 : vector<8x128xf32>
    %81 = arith.mulf %64, %72 : vector<8x128xf32>
    %82 = arith.addf %80, %81 : vector<8x128xf32>
    %83 = math.tanh %82 : vector<8x128xf32>
    %84 = arith.mulf %78, %83 : vector<8x128xf32>
    %85 = arith.truncf %84 : vector<8x128xf32> to vector<8x128xbf16>
    %c0_38 = arith.constant 0 : index
    %c0_39 = arith.constant 0 : index
    %86 = vector.load %arg8[%c0_38, %c0_39] : memref<8x128xf32, #tpu.memory_space<vmem>>, vector<8x128xf32>
    tpu.vector_store %arg8[%c0_38, %c0_39], %82 {strides = array<i32>} : memref<8x128xf32, #tpu.memory_space<vmem>>, vector<8x128xf32>,
    %c0_40 = arith.constant 0 : index
    %c0_41 = arith.constant 0 : index
    %87 = vector.load %arg7[%c0_40, %c0_41] : memref<8x128xbf16, #tpu.memory_space<vmem>>, vector<8x128xbf16>
    tpu.vector_store %arg7[%c0_40, %c0_41], %85 {strides = array<i32>} : memref<8x128xbf16, #tpu.memory_space<vmem>>, vector<8x128xbf16>,
    %88 = arith.index_cast %c1_i32 : i32 to index
    %c0_42 = arith.constant 0 : index
    %c0_43 = arith.constant 0 : index
    %89 = vector.load %arg5[%88, %c0_42, %c0_43] : memref<8x8x128xbf16, #tpu.memory_space<vmem>>, vector<1x8x128xbf16>
    %90 = vector.shape_cast %89 : vector<1x8x128xbf16> to vector<8x128xbf16>
    %91 = vector.shape_cast %85 : vector<8x128xbf16> to vector<1x8x128xbf16>
    tpu.vector_store %arg5[%88, %c0_42, %c0_43], %91 {strides = array<i32>} : memref<8x8x128xbf16, #tpu.memory_space<vmem>>, vector<1x8x128xbf16>,
    %c2_i32 = arith.constant 2 : i32
    %c8_i32_44 = arith.constant 8 : i32
    %92 = arith.muli %c2_i32, %c8_i32_44 : i32
    %93 = tpu.assume_multiple %92, 8 : i32
    %94 = arith.index_cast %93 : i32 to index
    %c0_45 = arith.constant 0 : index
    %95 = vector.load %arg6[%94, %c0_45] : memref<64x512xf32, #tpu.memory_space<vmem>>, vector<8x512xf32>
    %c0_46 = arith.constant 0 : index
    %c0_47 = arith.constant 0 : index
    %96 = vector.load %arg7[%c0_46, %c0_47] : memref<8x128xbf16, #tpu.memory_space<vmem>>, vector<8x128xbf16>
    %c0_48 = arith.constant 0 : index
    %c0_49 = arith.constant 0 : index
    %97 = vector.load %arg4[%c0_48, %c0_49] : memref<128x512xbf16, #tpu.memory_space<vmem>>, vector<128x512xbf16>
    %cst_50 = arith.constant dense<0.000000e+00> : vector<8x512xf32>
    %98 = tpu.matmul %96, %97, %cst_50 {dimension_numbers = #tpu.dot_dimension_numbers<[1], [0], [0], [1], [0, 0, 1, 1], [], []>} : vector<8x128xbf16>, vector<128x512xbf16>, vector<8x512xf32> -> vector<8x512xf32>
    %99 = arith.addf %95, %98 : vector<8x512xf32>
    %100 = vector.extract_strided_slice %99 {offsets = [0, 0], sizes = [8, 128], strides = [1, 1]} : vector<8x512xf32> to vector<8x128xf32>
    %101 = arith.negf %100 : vector<8x128xf32>
    %102 = math.exp %101 : vector<8x128xf32>
    %cst_51 = arith.constant 1.000000e+00 : f32
    %103 = vector.broadcast %cst_51 : f32 to vector<8x128xf32>
    %104 = arith.addf %103, %102 : vector<8x128xf32>
    %105 = arith.divf %103, %104 : vector<8x128xf32>
    %106 = vector.extract_strided_slice %99 {offsets = [0, 128], sizes = [8, 128], strides = [1, 1]} : vector<8x512xf32> to vector<8x128xf32>
    %107 = arith.negf %106 : vector<8x128xf32>
    %108 = math.exp %107 : vector<8x128xf32>
    %cst_52 = arith.constant 1.000000e+00 : f32
    %109 = vector.broadcast %cst_52 : f32 to vector<8x128xf32>
    %110 = arith.addf %109, %108 : vector<8x128xf32>
    %111 = arith.divf %109, %110 : vector<8x128xf32>
    %112 = vector.extract_strided_slice %99 {offsets = [0, 256], sizes = [8, 128], strides = [1, 1]} : vector<8x512xf32> to vector<8x128xf32>
    %113 = math.tanh %112 : vector<8x128xf32>
    %114 = vector.extract_strided_slice %99 {offsets = [0, 384], sizes = [8, 128], strides = [1, 1]} : vector<8x512xf32> to vector<8x128xf32>
    %115 = arith.negf %114 : vector<8x128xf32>
    %116 = math.exp %115 : vector<8x128xf32>
    %cst_53 = arith.constant 1.000000e+00 : f32
    %117 = vector.broadcast %cst_53 : f32 to vector<8x128xf32>
    %118 = arith.addf %117, %116 : vector<8x128xf32>
    %119 = arith.divf %117, %118 : vector<8x128xf32>
    %c0_54 = arith.constant 0 : index
    %c0_55 = arith.constant 0 : index
    %120 = vector.load %arg8[%c0_54, %c0_55] : memref<8x128xf32, #tpu.memory_space<vmem>>, vector<8x128xf32>
    %121 = arith.mulf %111, %120 : vector<8x128xf32>
    %122 = arith.mulf %105, %113 : vector<8x128xf32>
    %123 = arith.addf %121, %122 : vector<8x128xf32>
    %124 = math.tanh %123 : vector<8x128xf32>
    %125 = arith.mulf %119, %124 : vector<8x128xf32>
    %126 = arith.truncf %125 : vector<8x128xf32> to vector<8x128xbf16>
    %c0_56 = arith.constant 0 : index
    %c0_57 = arith.constant 0 : index
    %127 = vector.load %arg8[%c0_56, %c0_57] : memref<8x128xf32, #tpu.memory_space<vmem>>, vector<8x128xf32>
    tpu.vector_store %arg8[%c0_56, %c0_57], %123 {strides = array<i32>} : memref<8x128xf32, #tpu.memory_space<vmem>>, vector<8x128xf32>,
    %c0_58 = arith.constant 0 : index
    %c0_59 = arith.constant 0 : index
    %128 = vector.load %arg7[%c0_58, %c0_59] : memref<8x128xbf16, #tpu.memory_space<vmem>>, vector<8x128xbf16>
    tpu.vector_store %arg7[%c0_58, %c0_59], %126 {strides = array<i32>} : memref<8x128xbf16, #tpu.memory_space<vmem>>, vector<8x128xbf16>,
    %129 = arith.index_cast %c2_i32 : i32 to index
    %c0_60 = arith.constant 0 : index
    %c0_61 = arith.constant 0 : index
    %130 = vector.load %arg5[%129, %c0_60, %c0_61] : memref<8x8x128xbf16, #tpu.memory_space<vmem>>, vector<1x8x128xbf16>
    %131 = vector.shape_cast %130 : vector<1x8x128xbf16> to vector<8x128xbf16>
    %132 = vector.shape_cast %126 : vector<8x128xbf16> to vector<1x8x128xbf16>
    tpu.vector_store %arg5[%129, %c0_60, %c0_61], %132 {strides = array<i32>} : memref<8x8x128xbf16, #tpu.memory_space<vmem>>, vector<1x8x128xbf16>,
    %c3_i32 = arith.constant 3 : i32
    %c8_i32_62 = arith.constant 8 : i32
    %133 = arith.muli %c3_i32, %c8_i32_62 : i32
    %134 = tpu.assume_multiple %133, 8 : i32
    %135 = arith.index_cast %134 : i32 to index
    %c0_63 = arith.constant 0 : index
    %136 = vector.load %arg6[%135, %c0_63] : memref<64x512xf32, #tpu.memory_space<vmem>>, vector<8x512xf32>
    %c0_64 = arith.constant 0 : index
    %c0_65 = arith.constant 0 : index
    %137 = vector.load %arg7[%c0_64, %c0_65] : memref<8x128xbf16, #tpu.memory_space<vmem>>, vector<8x128xbf16>
    %c0_66 = arith.constant 0 : index
    %c0_67 = arith.constant 0 : index
    %138 = vector.load %arg4[%c0_66, %c0_67] : memref<128x512xbf16, #tpu.memory_space<vmem>>, vector<128x512xbf16>
    %cst_68 = arith.constant dense<0.000000e+00> : vector<8x512xf32>
    %139 = tpu.matmul %137, %138, %cst_68 {dimension_numbers = #tpu.dot_dimension_numbers<[1], [0], [0], [1], [0, 0, 1, 1], [], []>} : vector<8x128xbf16>, vector<128x512xbf16>, vector<8x512xf32> -> vector<8x512xf32>
    %140 = arith.addf %136, %139 : vector<8x512xf32>
    %141 = vector.extract_strided_slice %140 {offsets = [0, 0], sizes = [8, 128], strides = [1, 1]} : vector<8x512xf32> to vector<8x128xf32>
    %142 = arith.negf %141 : vector<8x128xf32>
    %143 = math.exp %142 : vector<8x128xf32>
    %cst_69 = arith.constant 1.000000e+00 : f32
    %144 = vector.broadcast %cst_69 : f32 to vector<8x128xf32>
    %145 = arith.addf %144, %143 : vector<8x128xf32>
    %146 = arith.divf %144, %145 : vector<8x128xf32>
    %147 = vector.extract_strided_slice %140 {offsets = [0, 128], sizes = [8, 128], strides = [1, 1]} : vector<8x512xf32> to vector<8x128xf32>
    %148 = arith.negf %147 : vector<8x128xf32>
    %149 = math.exp %148 : vector<8x128xf32>
    %cst_70 = arith.constant 1.000000e+00 : f32
    %150 = vector.broadcast %cst_70 : f32 to vector<8x128xf32>
    %151 = arith.addf %150, %149 : vector<8x128xf32>
    %152 = arith.divf %150, %151 : vector<8x128xf32>
    %153 = vector.extract_strided_slice %140 {offsets = [0, 256], sizes = [8, 128], strides = [1, 1]} : vector<8x512xf32> to vector<8x128xf32>
    %154 = math.tanh %153 : vector<8x128xf32>
    %155 = vector.extract_strided_slice %140 {offsets = [0, 384], sizes = [8, 128], strides = [1, 1]} : vector<8x512xf32> to vector<8x128xf32>
    %156 = arith.negf %155 : vector<8x128xf32>
    %157 = math.exp %156 : vector<8x128xf32>
    %cst_71 = arith.constant 1.000000e+00 : f32
    %158 = vector.broadcast %cst_71 : f32 to vector<8x128xf32>
    %159 = arith.addf %158, %157 : vector<8x128xf32>
    %160 = arith.divf %158, %159 : vector<8x128xf32>
    %c0_72 = arith.constant 0 : index
    %c0_73 = arith.constant 0 : index
    %161 = vector.load %arg8[%c0_72, %c0_73] : memref<8x128xf32, #tpu.memory_space<vmem>>, vector<8x128xf32>
    %162 = arith.mulf %152, %161 : vector<8x128xf32>
    %163 = arith.mulf %146, %154 : vector<8x128xf32>
    %164 = arith.addf %162, %163 : vector<8x128xf32>
    %165 = math.tanh %164 : vector<8x128xf32>
    %166 = arith.mulf %160, %165 : vector<8x128xf32>
    %167 = arith.truncf %166 : vector<8x128xf32> to vector<8x128xbf16>
    %c0_74 = arith.constant 0 : index
    %c0_75 = arith.constant 0 : index
    %168 = vector.load %arg8[%c0_74, %c0_75] : memref<8x128xf32, #tpu.memory_space<vmem>>, vector<8x128xf32>
    tpu.vector_store %arg8[%c0_74, %c0_75], %164 {strides = array<i32>} : memref<8x128xf32, #tpu.memory_space<vmem>>, vector<8x128xf32>,
    %c0_76 = arith.constant 0 : index
    %c0_77 = arith.constant 0 : index
    %169 = vector.load %arg7[%c0_76, %c0_77] : memref<8x128xbf16, #tpu.memory_space<vmem>>, vector<8x128xbf16>
    tpu.vector_store %arg7[%c0_76, %c0_77], %167 {strides = array<i32>} : memref<8x128xbf16, #tpu.memory_space<vmem>>, vector<8x128xbf16>,
    %170 = arith.index_cast %c3_i32 : i32 to index
    %c0_78 = arith.constant 0 : index
    %c0_79 = arith.constant 0 : index
    %171 = vector.load %arg5[%170, %c0_78, %c0_79] : memref<8x8x128xbf16, #tpu.memory_space<vmem>>, vector<1x8x128xbf16>
    %172 = vector.shape_cast %171 : vector<1x8x128xbf16> to vector<8x128xbf16>
    %173 = vector.shape_cast %167 : vector<8x128xbf16> to vector<1x8x128xbf16>
    tpu.vector_store %arg5[%170, %c0_78, %c0_79], %173 {strides = array<i32>} : memref<8x8x128xbf16, #tpu.memory_space<vmem>>, vector<1x8x128xbf16>,
    %c4_i32 = arith.constant 4 : i32
    %c8_i32_80 = arith.constant 8 : i32
    %174 = arith.muli %c4_i32, %c8_i32_80 : i32
    %175 = tpu.assume_multiple %174, 8 : i32
    %176 = arith.index_cast %175 : i32 to index
    %c0_81 = arith.constant 0 : index
    %177 = vector.load %arg6[%176, %c0_81] : memref<64x512xf32, #tpu.memory_space<vmem>>, vector<8x512xf32>
    %c0_82 = arith.constant 0 : index
    %c0_83 = arith.constant 0 : index
    %178 = vector.load %arg7[%c0_82, %c0_83] : memref<8x128xbf16, #tpu.memory_space<vmem>>, vector<8x128xbf16>
    %c0_84 = arith.constant 0 : index
    %c0_85 = arith.constant 0 : index
    %179 = vector.load %arg4[%c0_84, %c0_85] : memref<128x512xbf16, #tpu.memory_space<vmem>>, vector<128x512xbf16>
    %cst_86 = arith.constant dense<0.000000e+00> : vector<8x512xf32>
    %180 = tpu.matmul %178, %179, %cst_86 {dimension_numbers = #tpu.dot_dimension_numbers<[1], [0], [0], [1], [0, 0, 1, 1], [], []>} : vector<8x128xbf16>, vector<128x512xbf16>, vector<8x512xf32> -> vector<8x512xf32>
    %181 = arith.addf %177, %180 : vector<8x512xf32>
    %182 = vector.extract_strided_slice %181 {offsets = [0, 0], sizes = [8, 128], strides = [1, 1]} : vector<8x512xf32> to vector<8x128xf32>
    %183 = arith.negf %182 : vector<8x128xf32>
    %184 = math.exp %183 : vector<8x128xf32>
    %cst_87 = arith.constant 1.000000e+00 : f32
    %185 = vector.broadcast %cst_87 : f32 to vector<8x128xf32>
    %186 = arith.addf %185, %184 : vector<8x128xf32>
    %187 = arith.divf %185, %186 : vector<8x128xf32>
    %188 = vector.extract_strided_slice %181 {offsets = [0, 128], sizes = [8, 128], strides = [1, 1]} : vector<8x512xf32> to vector<8x128xf32>
    %189 = arith.negf %188 : vector<8x128xf32>
    %190 = math.exp %189 : vector<8x128xf32>
    %cst_88 = arith.constant 1.000000e+00 : f32
    %191 = vector.broadcast %cst_88 : f32 to vector<8x128xf32>
    %192 = arith.addf %191, %190 : vector<8x128xf32>
    %193 = arith.divf %191, %192 : vector<8x128xf32>
    %194 = vector.extract_strided_slice %181 {offsets = [0, 256], sizes = [8, 128], strides = [1, 1]} : vector<8x512xf32> to vector<8x128xf32>
    %195 = math.tanh %194 : vector<8x128xf32>
    %196 = vector.extract_strided_slice %181 {offsets = [0, 384], sizes = [8, 128], strides = [1, 1]} : vector<8x512xf32> to vector<8x128xf32>
    %197 = arith.negf %196 : vector<8x128xf32>
    %198 = math.exp %197 : vector<8x128xf32>
    %cst_89 = arith.constant 1.000000e+00 : f32
    %199 = vector.broadcast %cst_89 : f32 to vector<8x128xf32>
    %200 = arith.addf %199, %198 : vector<8x128xf32>
    %201 = arith.divf %199, %200 : vector<8x128xf32>
    %c0_90 = arith.constant 0 : index
    %c0_91 = arith.constant 0 : index
    %202 = vector.load %arg8[%c0_90, %c0_91] : memref<8x128xf32, #tpu.memory_space<vmem>>, vector<8x128xf32>
    %203 = arith.mulf %193, %202 : vector<8x128xf32>
    %204 = arith.mulf %187, %195 : vector<8x128xf32>
    %205 = arith.addf %203, %204 : vector<8x128xf32>
    %206 = math.tanh %205 : vector<8x128xf32>
    %207 = arith.mulf %201, %206 : vector<8x128xf32>
    %208 = arith.truncf %207 : vector<8x128xf32> to vector<8x128xbf16>
    %c0_92 = arith.constant 0 : index
    %c0_93 = arith.constant 0 : index
    %209 = vector.load %arg8[%c0_92, %c0_93] : memref<8x128xf32, #tpu.memory_space<vmem>>, vector<8x128xf32>
    tpu.vector_store %arg8[%c0_92, %c0_93], %205 {strides = array<i32>} : memref<8x128xf32, #tpu.memory_space<vmem>>, vector<8x128xf32>,
    %c0_94 = arith.constant 0 : index
    %c0_95 = arith.constant 0 : index
    %210 = vector.load %arg7[%c0_94, %c0_95] : memref<8x128xbf16, #tpu.memory_space<vmem>>, vector<8x128xbf16>
    tpu.vector_store %arg7[%c0_94, %c0_95], %208 {strides = array<i32>} : memref<8x128xbf16, #tpu.memory_space<vmem>>, vector<8x128xbf16>,
    %211 = arith.index_cast %c4_i32 : i32 to index
    %c0_96 = arith.constant 0 : index
    %c0_97 = arith.constant 0 : index
    %212 = vector.load %arg5[%211, %c0_96, %c0_97] : memref<8x8x128xbf16, #tpu.memory_space<vmem>>, vector<1x8x128xbf16>
    %213 = vector.shape_cast %212 : vector<1x8x128xbf16> to vector<8x128xbf16>
    %214 = vector.shape_cast %208 : vector<8x128xbf16> to vector<1x8x128xbf16>
    tpu.vector_store %arg5[%211, %c0_96, %c0_97], %214 {strides = array<i32>} : memref<8x8x128xbf16, #tpu.memory_space<vmem>>, vector<1x8x128xbf16>,
    %c5_i32 = arith.constant 5 : i32
    %c8_i32_98 = arith.constant 8 : i32
    %215 = arith.muli %c5_i32, %c8_i32_98 : i32
    %216 = tpu.assume_multiple %215, 8 : i32
    %217 = arith.index_cast %216 : i32 to index
    %c0_99 = arith.constant 0 : index
    %218 = vector.load %arg6[%217, %c0_99] : memref<64x512xf32, #tpu.memory_space<vmem>>, vector<8x512xf32>
    %c0_100 = arith.constant 0 : index
    %c0_101 = arith.constant 0 : index
    %219 = vector.load %arg7[%c0_100, %c0_101] : memref<8x128xbf16, #tpu.memory_space<vmem>>, vector<8x128xbf16>
    %c0_102 = arith.constant 0 : index
    %c0_103 = arith.constant 0 : index
    %220 = vector.load %arg4[%c0_102, %c0_103] : memref<128x512xbf16, #tpu.memory_space<vmem>>, vector<128x512xbf16>
    %cst_104 = arith.constant dense<0.000000e+00> : vector<8x512xf32>
    %221 = tpu.matmul %219, %220, %cst_104 {dimension_numbers = #tpu.dot_dimension_numbers<[1], [0], [0], [1], [0, 0, 1, 1], [], []>} : vector<8x128xbf16>, vector<128x512xbf16>, vector<8x512xf32> -> vector<8x512xf32>
    %222 = arith.addf %218, %221 : vector<8x512xf32>
    %223 = vector.extract_strided_slice %222 {offsets = [0, 0], sizes = [8, 128], strides = [1, 1]} : vector<8x512xf32> to vector<8x128xf32>
    %224 = arith.negf %223 : vector<8x128xf32>
    %225 = math.exp %224 : vector<8x128xf32>
    %cst_105 = arith.constant 1.000000e+00 : f32
    %226 = vector.broadcast %cst_105 : f32 to vector<8x128xf32>
    %227 = arith.addf %226, %225 : vector<8x128xf32>
    %228 = arith.divf %226, %227 : vector<8x128xf32>
    %229 = vector.extract_strided_slice %222 {offsets = [0, 128], sizes = [8, 128], strides = [1, 1]} : vector<8x512xf32> to vector<8x128xf32>
    %230 = arith.negf %229 : vector<8x128xf32>
    %231 = math.exp %230 : vector<8x128xf32>
    %cst_106 = arith.constant 1.000000e+00 : f32
    %232 = vector.broadcast %cst_106 : f32 to vector<8x128xf32>
    %233 = arith.addf %232, %231 : vector<8x128xf32>
    %234 = arith.divf %232, %233 : vector<8x128xf32>
    %235 = vector.extract_strided_slice %222 {offsets = [0, 256], sizes = [8, 128], strides = [1, 1]} : vector<8x512xf32> to vector<8x128xf32>
    %236 = math.tanh %235 : vector<8x128xf32>
    %237 = vector.extract_strided_slice %222 {offsets = [0, 384], sizes = [8, 128], strides = [1, 1]} : vector<8x512xf32> to vector<8x128xf32>
    %238 = arith.negf %237 : vector<8x128xf32>
    %239 = math.exp %238 : vector<8x128xf32>
    %cst_107 = arith.constant 1.000000e+00 : f32
    %240 = vector.broadcast %cst_107 : f32 to vector<8x128xf32>
    %241 = arith.addf %240, %239 : vector<8x128xf32>
    %242 = arith.divf %240, %241 : vector<8x128xf32>
    %c0_108 = arith.constant 0 : index
    %c0_109 = arith.constant 0 : index
    %243 = vector.load %arg8[%c0_108, %c0_109] : memref<8x128xf32, #tpu.memory_space<vmem>>, vector<8x128xf32>
    %244 = arith.mulf %234, %243 : vector<8x128xf32>
    %245 = arith.mulf %228, %236 : vector<8x128xf32>
    %246 = arith.addf %244, %245 : vector<8x128xf32>
    %247 = math.tanh %246 : vector<8x128xf32>
    %248 = arith.mulf %242, %247 : vector<8x128xf32>
    %249 = arith.truncf %248 : vector<8x128xf32> to vector<8x128xbf16>
    %c0_110 = arith.constant 0 : index
    %c0_111 = arith.constant 0 : index
    %250 = vector.load %arg8[%c0_110, %c0_111] : memref<8x128xf32, #tpu.memory_space<vmem>>, vector<8x128xf32>
    tpu.vector_store %arg8[%c0_110, %c0_111], %246 {strides = array<i32>} : memref<8x128xf32, #tpu.memory_space<vmem>>, vector<8x128xf32>,
    %c0_112 = arith.constant 0 : index
    %c0_113 = arith.constant 0 : index
    %251 = vector.load %arg7[%c0_112, %c0_113] : memref<8x128xbf16, #tpu.memory_space<vmem>>, vector<8x128xbf16>
    tpu.vector_store %arg7[%c0_112, %c0_113], %249 {strides = array<i32>} : memref<8x128xbf16, #tpu.memory_space<vmem>>, vector<8x128xbf16>,
    %252 = arith.index_cast %c5_i32 : i32 to index
    %c0_114 = arith.constant 0 : index
    %c0_115 = arith.constant 0 : index
    %253 = vector.load %arg5[%252, %c0_114, %c0_115] : memref<8x8x128xbf16, #tpu.memory_space<vmem>>, vector<1x8x128xbf16>
    %254 = vector.shape_cast %253 : vector<1x8x128xbf16> to vector<8x128xbf16>
    %255 = vector.shape_cast %249 : vector<8x128xbf16> to vector<1x8x128xbf16>
    tpu.vector_store %arg5[%252, %c0_114, %c0_115], %255 {strides = array<i32>} : memref<8x8x128xbf16, #tpu.memory_space<vmem>>, vector<1x8x128xbf16>,
    %c6_i32 = arith.constant 6 : i32
    %c8_i32_116 = arith.constant 8 : i32
    %256 = arith.muli %c6_i32, %c8_i32_116 : i32
    %257 = tpu.assume_multiple %256, 8 : i32
    %258 = arith.index_cast %257 : i32 to index
    %c0_117 = arith.constant 0 : index
    %259 = vector.load %arg6[%258, %c0_117] : memref<64x512xf32, #tpu.memory_space<vmem>>, vector<8x512xf32>
    %c0_118 = arith.constant 0 : index
    %c0_119 = arith.constant 0 : index
    %260 = vector.load %arg7[%c0_118, %c0_119] : memref<8x128xbf16, #tpu.memory_space<vmem>>, vector<8x128xbf16>
    %c0_120 = arith.constant 0 : index
    %c0_121 = arith.constant 0 : index
    %261 = vector.load %arg4[%c0_120, %c0_121] : memref<128x512xbf16, #tpu.memory_space<vmem>>, vector<128x512xbf16>
    %cst_122 = arith.constant dense<0.000000e+00> : vector<8x512xf32>
    %262 = tpu.matmul %260, %261, %cst_122 {dimension_numbers = #tpu.dot_dimension_numbers<[1], [0], [0], [1], [0, 0, 1, 1], [], []>} : vector<8x128xbf16>, vector<128x512xbf16>, vector<8x512xf32> -> vector<8x512xf32>
    %263 = arith.addf %259, %262 : vector<8x512xf32>
    %264 = vector.extract_strided_slice %263 {offsets = [0, 0], sizes = [8, 128], strides = [1, 1]} : vector<8x512xf32> to vector<8x128xf32>
    %265 = arith.negf %264 : vector<8x128xf32>
    %266 = math.exp %265 : vector<8x128xf32>
    %cst_123 = arith.constant 1.000000e+00 : f32
    %267 = vector.broadcast %cst_123 : f32 to vector<8x128xf32>
    %268 = arith.addf %267, %266 : vector<8x128xf32>
    %269 = arith.divf %267, %268 : vector<8x128xf32>
    %270 = vector.extract_strided_slice %263 {offsets = [0, 128], sizes = [8, 128], strides = [1, 1]} : vector<8x512xf32> to vector<8x128xf32>
    %271 = arith.negf %270 : vector<8x128xf32>
    %272 = math.exp %271 : vector<8x128xf32>
    %cst_124 = arith.constant 1.000000e+00 : f32
    %273 = vector.broadcast %cst_124 : f32 to vector<8x128xf32>
    %274 = arith.addf %273, %272 : vector<8x128xf32>
    %275 = arith.divf %273, %274 : vector<8x128xf32>
    %276 = vector.extract_strided_slice %263 {offsets = [0, 256], sizes = [8, 128], strides = [1, 1]} : vector<8x512xf32> to vector<8x128xf32>
    %277 = math.tanh %276 : vector<8x128xf32>
    %278 = vector.extract_strided_slice %263 {offsets = [0, 384], sizes = [8, 128], strides = [1, 1]} : vector<8x512xf32> to vector<8x128xf32>
    %279 = arith.negf %278 : vector<8x128xf32>
    %280 = math.exp %279 : vector<8x128xf32>
    %cst_125 = arith.constant 1.000000e+00 : f32
    %281 = vector.broadcast %cst_125 : f32 to vector<8x128xf32>
    %282 = arith.addf %281, %280 : vector<8x128xf32>
    %283 = arith.divf %281, %282 : vector<8x128xf32>
    %c0_126 = arith.constant 0 : index
    %c0_127 = arith.constant 0 : index
    %284 = vector.load %arg8[%c0_126, %c0_127] : memref<8x128xf32, #tpu.memory_space<vmem>>, vector<8x128xf32>
    %285 = arith.mulf %275, %284 : vector<8x128xf32>
    %286 = arith.mulf %269, %277 : vector<8x128xf32>
    %287 = arith.addf %285, %286 : vector<8x128xf32>
    %288 = math.tanh %287 : vector<8x128xf32>
    %289 = arith.mulf %283, %288 : vector<8x128xf32>
    %290 = arith.truncf %289 : vector<8x128xf32> to vector<8x128xbf16>
    %c0_128 = arith.constant 0 : index
    %c0_129 = arith.constant 0 : index
    %291 = vector.load %arg8[%c0_128, %c0_129] : memref<8x128xf32, #tpu.memory_space<vmem>>, vector<8x128xf32>
    tpu.vector_store %arg8[%c0_128, %c0_129], %287 {strides = array<i32>} : memref<8x128xf32, #tpu.memory_space<vmem>>, vector<8x128xf32>,
    %c0_130 = arith.constant 0 : index
    %c0_131 = arith.constant 0 : index
    %292 = vector.load %arg7[%c0_130, %c0_131] : memref<8x128xbf16, #tpu.memory_space<vmem>>, vector<8x128xbf16>
    tpu.vector_store %arg7[%c0_130, %c0_131], %290 {strides = array<i32>} : memref<8x128xbf16, #tpu.memory_space<vmem>>, vector<8x128xbf16>,
    %293 = arith.index_cast %c6_i32 : i32 to index
    %c0_132 = arith.constant 0 : index
    %c0_133 = arith.constant 0 : index
    %294 = vector.load %arg5[%293, %c0_132, %c0_133] : memref<8x8x128xbf16, #tpu.memory_space<vmem>>, vector<1x8x128xbf16>
    %295 = vector.shape_cast %294 : vector<1x8x128xbf16> to vector<8x128xbf16>
    %296 = vector.shape_cast %290 : vector<8x128xbf16> to vector<1x8x128xbf16>
    tpu.vector_store %arg5[%293, %c0_132, %c0_133], %296 {strides = array<i32>} : memref<8x8x128xbf16, #tpu.memory_space<vmem>>, vector<1x8x128xbf16>,
    %c7_i32 = arith.constant 7 : i32
    %c8_i32_134 = arith.constant 8 : i32
    %297 = arith.muli %c7_i32, %c8_i32_134 : i32
    %298 = tpu.assume_multiple %297, 8 : i32
    %299 = arith.index_cast %298 : i32 to index
    %c0_135 = arith.constant 0 : index
    %300 = vector.load %arg6[%299, %c0_135] : memref<64x512xf32, #tpu.memory_space<vmem>>, vector<8x512xf32>
    %c0_136 = arith.constant 0 : index
    %c0_137 = arith.constant 0 : index
    %301 = vector.load %arg7[%c0_136, %c0_137] : memref<8x128xbf16, #tpu.memory_space<vmem>>, vector<8x128xbf16>
    %c0_138 = arith.constant 0 : index
    %c0_139 = arith.constant 0 : index
    %302 = vector.load %arg4[%c0_138, %c0_139] : memref<128x512xbf16, #tpu.memory_space<vmem>>, vector<128x512xbf16>
    %cst_140 = arith.constant dense<0.000000e+00> : vector<8x512xf32>
    %303 = tpu.matmul %301, %302, %cst_140 {dimension_numbers = #tpu.dot_dimension_numbers<[1], [0], [0], [1], [0, 0, 1, 1], [], []>} : vector<8x128xbf16>, vector<128x512xbf16>, vector<8x512xf32> -> vector<8x512xf32>
    %304 = arith.addf %300, %303 : vector<8x512xf32>
    %305 = vector.extract_strided_slice %304 {offsets = [0, 0], sizes = [8, 128], strides = [1, 1]} : vector<8x512xf32> to vector<8x128xf32>
    %306 = arith.negf %305 : vector<8x128xf32>
    %307 = math.exp %306 : vector<8x128xf32>
    %cst_141 = arith.constant 1.000000e+00 : f32
    %308 = vector.broadcast %cst_141 : f32 to vector<8x128xf32>
    %309 = arith.addf %308, %307 : vector<8x128xf32>
    %310 = arith.divf %308, %309 : vector<8x128xf32>
    %311 = vector.extract_strided_slice %304 {offsets = [0, 128], sizes = [8, 128], strides = [1, 1]} : vector<8x512xf32> to vector<8x128xf32>
    %312 = arith.negf %311 : vector<8x128xf32>
    %313 = math.exp %312 : vector<8x128xf32>
    %cst_142 = arith.constant 1.000000e+00 : f32
    %314 = vector.broadcast %cst_142 : f32 to vector<8x128xf32>
    %315 = arith.addf %314, %313 : vector<8x128xf32>
    %316 = arith.divf %314, %315 : vector<8x128xf32>
    %317 = vector.extract_strided_slice %304 {offsets = [0, 256], sizes = [8, 128], strides = [1, 1]} : vector<8x512xf32> to vector<8x128xf32>
    %318 = math.tanh %317 : vector<8x128xf32>
    %319 = vector.extract_strided_slice %304 {offsets = [0, 384], sizes = [8, 128], strides = [1, 1]} : vector<8x512xf32> to vector<8x128xf32>
    %320 = arith.negf %319 : vector<8x128xf32>
    %321 = math.exp %320 : vector<8x128xf32>
    %cst_143 = arith.constant 1.000000e+00 : f32
    %322 = vector.broadcast %cst_143 : f32 to vector<8x128xf32>
    %323 = arith.addf %322, %321 : vector<8x128xf32>
    %324 = arith.divf %322, %323 : vector<8x128xf32>
    %c0_144 = arith.constant 0 : index
    %c0_145 = arith.constant 0 : index
    %325 = vector.load %arg8[%c0_144, %c0_145] : memref<8x128xf32, #tpu.memory_space<vmem>>, vector<8x128xf32>
    %326 = arith.mulf %316, %325 : vector<8x128xf32>
    %327 = arith.mulf %310, %318 : vector<8x128xf32>
    %328 = arith.addf %326, %327 : vector<8x128xf32>
    %329 = math.tanh %328 : vector<8x128xf32>
    %330 = arith.mulf %324, %329 : vector<8x128xf32>
    %331 = arith.truncf %330 : vector<8x128xf32> to vector<8x128xbf16>
    %c0_146 = arith.constant 0 : index
    %c0_147 = arith.constant 0 : index
    %332 = vector.load %arg8[%c0_146, %c0_147] : memref<8x128xf32, #tpu.memory_space<vmem>>, vector<8x128xf32>
    tpu.vector_store %arg8[%c0_146, %c0_147], %328 {strides = array<i32>} : memref<8x128xf32, #tpu.memory_space<vmem>>, vector<8x128xf32>,
    %c0_148 = arith.constant 0 : index
    %c0_149 = arith.constant 0 : index
    %333 = vector.load %arg7[%c0_148, %c0_149] : memref<8x128xbf16, #tpu.memory_space<vmem>>, vector<8x128xbf16>
    tpu.vector_store %arg7[%c0_148, %c0_149], %331 {strides = array<i32>} : memref<8x128xbf16, #tpu.memory_space<vmem>>, vector<8x128xbf16>,
    %334 = arith.index_cast %c7_i32 : i32 to index
    %c0_150 = arith.constant 0 : index
    %c0_151 = arith.constant 0 : index
    %335 = vector.load %arg5[%334, %c0_150, %c0_151] : memref<8x8x128xbf16, #tpu.memory_space<vmem>>, vector<1x8x128xbf16>
    %336 = vector.shape_cast %335 : vector<1x8x128xbf16> to vector<8x128xbf16>
    %337 = vector.shape_cast %331 : vector<8x128xbf16> to vector<1x8x128xbf16>
    tpu.vector_store %arg5[%334, %c0_150, %c0_151], %337 {strides = array<i32>} : memref<8x8x128xbf16, #tpu.memory_space<vmem>>, vector<1x8x128xbf16>,
    %c8_i32_152 = arith.constant 8 : i32
    return
  }
  func.func @transform_0(%arg0: i32) -> (i32, i32) {
    %c0_i32 = arith.constant 0 : i32
    %c0_i32_0 = arith.constant 0 : i32
    return %arg0, %c0_i32 : i32, i32
  }
  func.func @transform_1(%arg0: i32) -> (i32, i32) {
    %c0_i32 = arith.constant 0 : i32
    %c0_i32_0 = arith.constant 0 : i32
    %c0_i32_1 = arith.constant 0 : i32
    return %c0_i32, %c0_i32_0 : i32, i32
  }
  func.func @transform_2(%arg0: i32) -> (i32, i32) {
    %c0_i32 = arith.constant 0 : i32
    %c0_i32_0 = arith.constant 0 : i32
    %c0_i32_1 = arith.constant 0 : i32
    return %c0_i32, %c0_i32_0 : i32, i32
  }
  func.func @transform_3(%arg0: i32) -> (i32, i32) {
    %c0_i32 = arith.constant 0 : i32
    %c0_i32_0 = arith.constant 0 : i32
    %c0_i32_1 = arith.constant 0 : i32
    return %c0_i32, %c0_i32_0 : i32, i32
  }
  func.func @transform_4(%arg0: i32) -> (i32, i32, i32) {
    %c0_i32 = arith.constant 0 : i32
    %c0_i32_0 = arith.constant 0 : i32
    %c0_i32_1 = arith.constant 0 : i32
    return %arg0, %c0_i32, %c0_i32_0 : i32, i32, i32
  }
}

module attributes {stable_mosaic.version = 11 : i64} {
  func.func @_matmul_bias_kernel(%arg0: i32, %arg1: i32, %arg2: memref<40x128xbf16, #tpu.memory_space<vmem>>, %arg3: memref<128x512xbf16, #tpu.memory_space<vmem>>, %arg4: memref<1x512xf32, #tpu.memory_space<vmem>>, %arg5: memref<40x512xf32, #tpu.memory_space<vmem>>) attributes {dimension_semantics = [#tpu.dimension_semantics<parallel>, #tpu.dimension_semantics<parallel>], iteration_bounds = array<i64: 1, 2>, scalar_prefetch = 0 : i64, scratch_operands = 0 : i64, tpu.core_type = #tpu.core_type<tc>, window_params = [{transform_indices = @transform_0, window_bounds = array<i64: 40, 128>}, {transform_indices = @transform_1, window_bounds = array<i64: 128, 512>}, {transform_indices = @transform_2, window_bounds = array<i64: 1, 512>}, {transform_indices = @transform_3, window_bounds = array<i64: 40, 512>}]} {
    %c0 = arith.constant 0 : index
    %c0_0 = arith.constant 0 : index
    %0 = vector.load %arg2[%c0, %c0_0] : memref<40x128xbf16, #tpu.memory_space<vmem>>, vector<40x128xbf16>
    %c0_1 = arith.constant 0 : index
    %c0_2 = arith.constant 0 : index
    %1 = vector.load %arg3[%c0_1, %c0_2] : memref<128x512xbf16, #tpu.memory_space<vmem>>, vector<128x512xbf16>
    %cst = arith.constant dense<0.000000e+00> : vector<40x512xf32>
    %2 = tpu.matmul %0, %1, %cst {dimension_numbers = #tpu.dot_dimension_numbers<[1], [0], [0], [1], [0, 0, 1, 1], [], []>} : vector<40x128xbf16>, vector<128x512xbf16>, vector<40x512xf32> -> vector<40x512xf32>
    %c0_3 = arith.constant 0 : index
    %c0_4 = arith.constant 0 : index
    %3 = vector.load %arg4[%c0_3, %c0_4] : memref<1x512xf32, #tpu.memory_space<vmem>>, vector<1x512xf32>
    %4 = vector.broadcast %3 : vector<1x512xf32> to vector<40x512xf32>
    %5 = arith.addf %2, %4 : vector<40x512xf32>
    %c0_5 = arith.constant 0 : index
    %c0_6 = arith.constant 0 : index
    %6 = vector.load %arg5[%c0_5, %c0_6] : memref<40x512xf32, #tpu.memory_space<vmem>>, vector<40x512xf32>
    tpu.vector_store %arg5[%c0_5, %c0_6], %5 {strides = array<i32>} : memref<40x512xf32, #tpu.memory_space<vmem>>, vector<40x512xf32>,
    return
  }
  func.func @transform_0(%arg0: i32, %arg1: i32) -> (i32, i32) {
    %c0_i32 = arith.constant 0 : i32
    %c0_i32_0 = arith.constant 0 : i32
    return %arg0, %c0_i32 : i32, i32
  }
  func.func @transform_1(%arg0: i32, %arg1: i32) -> (i32, i32) {
    %c0_i32 = arith.constant 0 : i32
    %c0_i32_0 = arith.constant 0 : i32
    return %c0_i32, %arg1 : i32, i32
  }
  func.func @transform_2(%arg0: i32, %arg1: i32) -> (i32, i32) {
    %c0_i32 = arith.constant 0 : i32
    %c0_i32_0 = arith.constant 0 : i32
    return %c0_i32, %arg1 : i32, i32
  }
  func.func @transform_3(%arg0: i32, %arg1: i32) -> (i32, i32) {
    %c0_i32 = arith.constant 0 : i32
    return %arg0, %arg1 : i32, i32
  }
}

</mosaic_0001>

<bundles_post_ra>
// kernel: decoder_rnn_forward.3
= control target key start
LH: loop header
LB: loop body
LE: loop exit
PB: predicated region body
PF: predicated region fallthrough
CT: control target
= control target key end

     0   :  { %s1049_s12 = smov 0   ;;  %s1051_s13 = smov 0   ;;  %s1310_s0 = inlined_call_operand.vmem [shape: bf16[40,128], index: 0, kind: input, shape index: {}]   ;;  %s1311_s1 = inlined_call_operand.vmem [shape: bf16[128,1024], index: 1, kind: input, shape index: {}]   ;;  %s1312_s2 = inlined_call_operand.vmem [shape: f32[1,1024], index: 2, kind: input, shape index: {}]   ;;  %s1313_s3 = inlined_call_operand.vmem [shape: f32[40,1024], index: 3, kind: output, shape index: {}]  }
   0x1   :  { %s1053_s14 = smov 0   ;;  %s1055_s15 = smov 0  }
   0x2   :  { %s1057_s16 = smov 0  }
   0x3 LB: > { %s22_s17 = sadd.s32 1, %s1022_s15  ;;  %s843_s18 = sadd.s32 4294967295, %s1026_s16   ;;  %s1026_s16 = sphi %s1057_s16, %s13_s16   ;;  %s1022_s15 = sphi %s1055_s15, %s1318_s15   ;;  %s1018_s14 = sphi %s1053_s14, %s1317_s14   ;;  %s1014_s13 = sphi %s1051_s13, %s1316_s13   ;;  %s1010_s12 = sphi %s1049_s12, %s1315_s12  }
   0x4   : > { %p23_p0 = scmp.ge.s32.totalorder %s22_s17, 2  ;;  %p65_p1 = scmp.ne.s32.totalorder %s1014_s13, %s1010_s12 }
   0x5   : > { %p66_p2 = scmp.eq.s32.totalorder %s1026_s16, 0  ;;  %p123_p4 = scmp.eq.s32.totalorder %s843_s18, 1 }
   0x6   : > { %s1320_s17 = smov (%p23_p0, %s22_s17), 0  ;;  %s58_s20 = sadd.s32 1, %s1014_s13 }
   0x7   : > { %p67_p3 = por %p66_p2, %p65_p1  ;;  %s55_s19 = ssub.s32 %s1022_s15, %s1320_s17 }
   0x8   : > { %p56_p5 = scmp.eq.s32.totalorder %s55_s19, 0  ;;  %p1084_p6 = por %p123_p4, %p65_p1 }
   0x9   : > { %p847_p7 = scmp.ge.s32.totalorder %s1026_s16, 2 }
   0xa   : > { %s1089_s22 = scalar_select %p56_p5, %s1014_s13, %s58_s20  }
   0xb   : > { %154 = sbr.rel (%p847_p7) target bundleno = 38 (0x26), region = 20 }
  0x12   : > { %157 = sbr.rel (!%p67_p3) target bundleno = 38 (0x26), region = 24  ;;  %s159_s23 = sand.u32 (%p67_p3), 1, %s1014_s13  }
  0x13   : > { %s893_s24 = sshll.u32 (%p67_p3), %s1022_s15, 4  ;;  %s848_s25 = sshll.u32 (%p67_p3), %s159_s23, 8 }
  0x14   : > { %s1097_s28 = scalar_lea.vmem (%p67_p3), %s1311_s1, %s893_s24  ;;  %s1102_s29 = scalar_lea.vmem (%p67_p3), [#allocation2], %s848_s25 }
  0x15   : > { %v177_v0 = vld [vmem:[%s1097_s28] sm:$0xff] (%p67_p3)  ;;  %v179_v1 = vld [vmem:[%s1097_s28 + $0x8] sm:$0xff] (%p67_p3) }
  0x16   : > { %v181_v2 = vld [vmem:[%s1097_s28 + $0x20] sm:$0xff] (%p67_p3)  ;;  %178 = vst [vmem:[%s1102_s29] sm:$0xff] (%p67_p3), %v177_v0  ;;  %180 = vst [vmem:[%s1102_s29 + $0x8] sm:$0xff] (%p67_p3), %v179_v1  ;;  %v183_v3 = vld [vmem:[%s1097_s28 + $0x28] sm:$0xff] (%p67_p3) }
  0x17   : > { %182 = vst [vmem:[%s1102_s29 + $0x10] sm:$0xff] (%p67_p3), %v181_v2  ;;  %v185_v4 = vld [vmem:[%s1097_s28 + $0x40] sm:$0xff] (%p67_p3)  ;;  %v187_v5 = vld [vmem:[%s1097_s28 + $0x48] sm:$0xff] (%p67_p3)  ;;  %184 = vst [vmem:[%s1102_s29 + $0x18] sm:$0xff] (%p67_p3), %v183_v3 }
  0x18   : > { %186 = vst [vmem:[%s1102_s29 + $0x20] sm:$0xff] (%p67_p3), %v185_v4  ;;  %188 = vst [vmem:[%s1102_s29 + $0x28] sm:$0xff] (%p67_p3), %v187_v5  ;;  %v189_v6 = vld [vmem:[%s1097_s28 + $0x60] sm:$0xff] (%p67_p3)  ;;  %v191_v7 = vld [vmem:[%s1097_s28 + $0x68] sm:$0xff] (%p67_p3) }
  0x19   : > { %v193_v8 = vld [vmem:[%s1097_s28 + $0x80] sm:$0xff]  ;;  %190 = vst [vmem:[%s1102_s29 + $0x30] sm:$0xff] %v189_v6  ;;  %192 = vst [vmem:[%s1102_s29 + $0x38] sm:$0xff] %v191_v7  ;;  %v195_v9 = vld [vmem:[%s1097_s28 + $0x88] sm:$0xff] }
  0x1a   : > { %194 = vst [vmem:[%s1102_s29 + $0x40] sm:$0xff] %v193_v8  ;;  %v197_v10 = vld [vmem:[%s1097_s28 + $0xa0] sm:$0xff]  ;;  %v199_v11 = vld [vmem:[%s1097_s28 + $0xa8] sm:$0xff]  ;;  %196 = vst [vmem:[%s1102_s29 + $0x48] sm:$0xff] %v195_v9 }
  0x1b   : > { %198 = vst [vmem:[%s1102_s29 + $0x50] sm:$0xff] %v197_v10  ;;  %200 = vst [vmem:[%s1102_s29 + $0x58] sm:$0xff] %v199_v11  ;;  %v201_v12 = vld [vmem:[%s1097_s28 + $0xc0] sm:$0xff]  ;;  %v203_v13 = vld [vmem:[%s1097_s28 + $0xc8] sm:$0xff] }
  0x1c   : > { %v205_v14 = vld [vmem:[%s1097_s28 + $0xe0] sm:$0xff]  ;;  %202 = vst [vmem:[%s1102_s29 + $0x60] sm:$0xff] %v201_v12  ;;  %204 = vst [vmem:[%s1102_s29 + $0x68] sm:$0xff] %v203_v13  ;;  %v207_v15 = vld [vmem:[%s1097_s28 + $0xe8] sm:$0xff] }
  0x1d   : > { %206 = vst [vmem:[%s1102_s29 + $0x70] sm:$0xff] %v205_v14  ;;  %v209_v16 = vld [vmem:[%s1097_s28 + $0x100] sm:$0xff]  ;;  %v211_v17 = vld [vmem:[%s1097_s28 + $0x108] sm:$0xff]  ;;  %208 = vst [vmem:[%s1102_s29 + $0x78] sm:$0xff] %v207_v15 }
  0x1e   : > { %210 = vst [vmem:[%s1102_s29 + $0x80] sm:$0xff] %v209_v16  ;;  %212 = vst [vmem:[%s1102_s29 + $0x88] sm:$0xff] %v211_v17  ;;  %v213_v18 = vld [vmem:[%s1097_s28 + $0x120] sm:$0xff]  ;;  %v215_v19 = vld [vmem:[%s1097_s28 + $0x128] sm:$0xff] }
  0x1f   : > { %v217_v20 = vld [vmem:[%s1097_s28 + $0x140] sm:$0xff]  ;;  %214 = vst [vmem:[%s1102_s29 + $0x90] sm:$0xff] %v213_v18  ;;  %216 = vst [vmem:[%s1102_s29 + $0x98] sm:$0xff] %v215_v19  ;;  %v219_v21 = vld [vmem:[%s1097_s28 + $0x148] sm:$0xff] }
  0x20   : > { %218 = vst [vmem:[%s1102_s29 + $0xa0] sm:$0xff] %v217_v20  ;;  %v221_v22 = vld [vmem:[%s1097_s28 + $0x160] sm:$0xff]  ;;  %v223_v23 = vld [vmem:[%s1097_s28 + $0x168] sm:$0xff]  ;;  %220 = vst [vmem:[%s1102_s29 + $0xa8] sm:$0xff] %v219_v21 }
  0x21   : > { %222 = vst [vmem:[%s1102_s29 + $0xb0] sm:$0xff] %v221_v22  ;;  %224 = vst [vmem:[%s1102_s29 + $0xb8] sm:$0xff] %v223_v23  ;;  %v225_v24 = vld [vmem:[%s1097_s28 + $0x180] sm:$0xff]  ;;  %v227_v25 = vld [vmem:[%s1097_s28 + $0x188] sm:$0xff] }
  0x22   : > { %v229_v26 = vld [vmem:[%s1097_s28 + $0x1a0] sm:$0xff]  ;;  %226 = vst [vmem:[%s1102_s29 + $0xc0] sm:$0xff] %v225_v24  ;;  %228 = vst [vmem:[%s1102_s29 + $0xc8] sm:$0xff] %v227_v25  ;;  %v231_v27 = vld [vmem:[%s1097_s28 + $0x1a8] sm:$0xff] }
  0x23   : > { %230 = vst [vmem:[%s1102_s29 + $0xd0] sm:$0xff] %v229_v26  ;;  %v233_v28 = vld [vmem:[%s1097_s28 + $0x1c0] sm:$0xff]  ;;  %v235_v29 = vld [vmem:[%s1097_s28 + $0x1c8] sm:$0xff]  ;;  %232 = vst [vmem:[%s1102_s29 + $0xd8] sm:$0xff] %v231_v27 }
  0x24   : > { %234 = vst [vmem:[%s1102_s29 + $0xe0] sm:$0xff] %v233_v28  ;;  %236 = vst [vmem:[%s1102_s29 + $0xe8] sm:$0xff] %v235_v29  ;;  %v237_v30 = vld [vmem:[%s1097_s28 + $0x1e0] sm:$0xff]  ;;  %v239_v31 = vld [vmem:[%s1097_s28 + $0x1e8] sm:$0xff] }
  0x25   : > { %238 = vst [vmem:[%s1102_s29 + $0xf0] sm:$0xff] %v237_v30  ;;  %240 = vst [vmem:[%s1102_s29 + $0xf8] sm:$0xff] %v239_v31 }
  0x26 PF: > { %p851_p8 = scmp.ge.s32.totalorder %s1026_s16, 1  ;;  %p253_p9 = scmp.lt.s32.totalorder %s1026_s16, 3 }
  0x28   : > { %p254_p10 = pnand %p851_p8, %p253_p9 }
  0x29   : > { %s260_s30 = sand.u32 (!%p254_p10), 1, %s1010_s12   ;;  %v1028_v32 = vmov (!%p254_p10), 0   ;;  %v985_v1 = vld [vmem:[%s1310_s0] sm:$0xff] (!%p254_p10)   ;;  %v986_v2 = vld [vmem:[%s1310_s0 + $0x8] sm:$0xff] (!%p254_p10)   ;;  %v987_v3 = vld [vmem:[%s1310_s0 + $0x10] ss:$0 sps:$4 sm:$0xff] (!%p254_p10)   ;;  %v345_v4 = vlaneseq (!%p254_p10) }
  0x2a   : > { %257 = sbr.rel (%p254_p10) target bundleno = 317 (0x13d), region = 51  ;;  %s852_s4 = sshll.u32 (!%p254_p10), %s260_s30, 8  ;;  %573 = vmatprep.mubr.bf16.mxu0 (!%p254_p10), %v1028_v32  ;;  %634 = vmatprep.mubr.bf16.mxu1 (!%p254_p10), %v1028_v32 }
  0x2b   : > { %s1172_s5 = scalar_lea.vmem (!%p254_p10), [#allocation2], %s852_s4  ;;  %s853_s18 = sshll.u32 (!%p254_p10), %s1018_s14, 2  ;;  %v346_v5 = vshrl.u32 (!%p254_p10), %v345_v4, 7 }
  0x2c   : > { %v937_v33 = vld [vmem:[%s1172_s5 + $0x4] ss:$16 sps:$4 sm:$0xff] (!%p254_p10)   ;;  %v939_v34 = vld [vmem:[%s1172_s5 + $0xc] ss:$16 sps:$4 sm:$0xff] (!%p254_p10)   ;;  %v941_v35 = vld [vmem:[%s1172_s5] ss:$16 sps:$4 sm:$0xff] (!%p254_p10)  }
  0x2d   : > { %541 = vmatprep.subr.bf16.mxu0 (!%p254_p10), %v937_v33  ;;  %v942_v36 = vld [vmem:[%s1172_s5 + $0x8] ss:$16 sps:$4 sm:$0xff] (!%p254_p10)   ;;  %602 = vmatprep.subr.bf16.mxu1 (!%p254_p10), %v939_v34  ;;  %v943_v37 = vld [vmem:[%s1172_s5 + $0x24] ss:$16 sps:$4 sm:$0xff] (!%p254_p10)   ;;  %v945_v38 = vld [vmem:[%s1172_s5 + $0x2c] ss:$16 sps:$4 sm:$0xff] (!%p254_p10)  }
  0x2e   : > { %542 = vmatpush1.bf16.msra.mxu0 (!%p254_p10), %v941_v35  ;;  %603 = vmatpush1.bf16.msra.mxu1 (!%p254_p10), %v942_v36  ;;  %v947_v39 = vld [vmem:[%s1172_s5 + $0x20] ss:$16 sps:$4 sm:$0xff] (!%p254_p10)   ;;  %v948_v40 = vld [vmem:[%s1172_s5 + $0x28] ss:$16 sps:$4 sm:$0xff] (!%p254_p10)   ;;  %v949_v41 = vld [vmem:[%s1172_s5 + $0x44] ss:$16 sps:$4 sm:$0xff] (!%p254_p10)  }
  0x2f   : > { %543 = vmatprep.subr.bf16.mxu0 (!%p254_p10), %v943_v37  ;;  %604 = vmatprep.subr.bf16.mxu1 (!%p254_p10), %v945_v38  ;;  %v951_v42 = vld [vmem:[%s1172_s5 + $0x4c] ss:$16 sps:$4 sm:$0xff] (!%p254_p10)   ;;  %v953_v43 = vld [vmem:[%s1172_s5 + $0x40] ss:$16 sps:$4 sm:$0xff] (!%p254_p10)   ;;  %v954_v44 = vld [vmem:[%s1172_s5 + $0x48] ss:$16 sps:$4 sm:$0xff] (!%p254_p10)  }
  0x30   : > { %v955_v45 = vld [vmem:[%s1172_s5 + $0x64] ss:$16 sps:$4 sm:$0xff] (!%p254_p10)   ;;  %v957_v46 = vld [vmem:[%s1172_s5 + $0x6c] ss:$16 sps:$4 sm:$0xff] (!%p254_p10)   ;;  %v959_v47 = vld [vmem:[%s1172_s5 + $0x60] ss:$16 sps:$4 sm:$0xff] (!%p254_p10)  }
  0x31   : > { %v960_v48 = vld [vmem:[%s1172_s5 + $0x68] ss:$16 sps:$4 sm:$0xff]   ;;  %v961_v49 = vld [vmem:[%s1172_s5 + $0x84] ss:$16 sps:$4 sm:$0xff]   ;;  %v963_v50 = vld [vmem:[%s1172_s5 + $0x8c] ss:$16 sps:$4 sm:$0xff]  }
  0x32   : > { %544 = vmatpush1.bf16.msra.mxu0 %v947_v39  ;;  %605 = vmatpush1.bf16.msra.mxu1 %v948_v40  ;;  %v965_v51 = vld [vmem:[%s1172_s5 + $0x80] ss:$16 sps:$4 sm:$0xff]   ;;  %v966_v52 = vld [vmem:[%s1172_s5 + $0x88] ss:$16 sps:$4 sm:$0xff]   ;;  %v967_v53 = vld [vmem:[%s1172_s5 + $0xa4] ss:$16 sps:$4 sm:$0xff]  }
  0x33   : > { %545 = vmatprep.subr.bf16.mxu0 %v949_v41  ;;  %606 = vmatprep.subr.bf16.mxu1 %v951_v42  ;;  %v969_v54 = vld [vmem:[%s1172_s5 + $0xac] ss:$16 sps:$4 sm:$0xff]   ;;  %v971_v55 = vld [vmem:[%s1172_s5 + $0xa0] ss:$16 sps:$4 sm:$0xff]   ;;  %v972_v56 = vld [vmem:[%s1172_s5 + $0xa8] ss:$16 sps:$4 sm:$0xff]  }
  0x34   : > { %v973_v57 = vld [vmem:[%s1172_s5 + $0xc4] ss:$16 sps:$4 sm:$0xff]   ;;  %v975_v58 = vld [vmem:[%s1172_s5 + $0xcc] ss:$16 sps:$4 sm:$0xff]   ;;  %v977_v59 = vld [vmem:[%s1172_s5 + $0xc0] ss:$16 sps:$4 sm:$0xff]  }
  0x35   : > { %v978_v60 = vld [vmem:[%s1172_s5 + $0xc8] ss:$16 sps:$4 sm:$0xff]   ;;  %v979_v61 = vld [vmem:[%s1172_s5 + $0xe4] ss:$16 sps:$4 sm:$0xff]   ;;  %v981_v62 = vld [vmem:[%s1172_s5 + $0xec] ss:$16 sps:$4 sm:$0xff]  }
  0x36   : > { %546 = vmatpush1.bf16.msra.mxu0 %v953_v43  ;;  %607 = vmatpush1.bf16.msra.mxu1 %v954_v44  ;;  %v983_v63 = vld [vmem:[%s1172_s5 + $0xe0] ss:$16 sps:$4 sm:$0xff]   ;;  %v984_v0 = vld [vmem:[%s1172_s5 + $0xe8] ss:$16 sps:$4 sm:$0xff]   ;;  %p299_p11 = scmp.lt.s32.totalorder %s853_s18, 7  ;;  %v347_v6 = vsub.s32 0, %v346_v5 }
  0x37   : > { %547 = vmatprep.subr.bf16.mxu0 %v955_v45  ;;  %608 = vmatprep.subr.bf16.mxu1 %v957_v46  ;;  %v355_v7 = vsub.s32 2, %v346_v5  ;;  %v351_v9 = vsub.s32 1, %v346_v5  ;;  %v359_v10 = vsub.s32 3, %v346_v5  ;;  %s895_s24 = smul.u32 160, %s260_s30  ;;  %s894_s12 = sshll.u32 (%p1084_p6), %s1018_s14, 5 }
  0x38   : > { %s1322_s18 = smov (!%p299_p11, %s853_s18), 7  ;;  %s1256_s28 = scalar_lea.vmem (%p1084_p6), %s1313_s3, %s894_s12 }
  0x39   : > { %s301_s23 = scalar_lea.vmem %s1312_s2, %s1322_s18  ;;  %s1225_s25 = scalar_lea.vmem [#allocation3], %s895_s24 }
  0x3a   : > { %548 = vmatpush1.bf16.msra.mxu0 %v959_v47  ;;  %609 = vmatpush1.bf16.msra.mxu1 %v960_v48  ;;  %v343_v8 = vld [vmem:[%s301_s23] sm:$0xf] }
  0x3b   : > { %549 = vmatprep.subr.bf16.mxu0 %v961_v49  ;;  %610 = vmatprep.subr.bf16.mxu1 %v963_v50  ;;  %v348_v11 = vrot.slane %v343_v8, %v347_v6  ;;  %v356_v12 = vrot.slane %v343_v8, %v355_v7  ;;  %v352_v13 = vrot.slane %v343_v8, %v351_v9 }
  0x3c   : > { %v360_v14 = vrot.slane %v343_v8, %v359_v10 }
  0x3e   : > { %550 = vmatpush1.bf16.msra.mxu0 %v965_v51  ;;  %611 = vmatpush1.bf16.msra.mxu1 %v966_v52 }
  0x3f   : > { %551 = vmatprep.subr.bf16.mxu0 %v967_v53  ;;  %612 = vmatprep.subr.bf16.mxu1 %v969_v54 }
  0x42   : > { %552 = vmatpush1.bf16.msra.mxu0 %v971_v55  ;;  %613 = vmatpush1.bf16.msra.mxu1 %v972_v56 }
  0x43   : > { %553 = vmatprep.subr.bf16.mxu0 %v973_v57  ;;  %614 = vmatprep.subr.bf16.mxu1 %v975_v58 }
  0x46   : > { %554 = vmatpush1.bf16.msra.mxu0 %v977_v59  ;;  %615 = vmatpush1.bf16.msra.mxu1 %v978_v60 }
  0x47   : > { %555 = vmatprep.subr.bf16.mxu0 %v979_v61  ;;  %616 = vmatprep.subr.bf16.mxu1 %v981_v62 }
  0x4a   : > { %556 = vmatpush1.bf16.msra.mxu0 %v983_v63  ;;  %617 = vmatpush1.bf16.msra.mxu1 %v984_v0 }
  0x4d   : > { %574 = vmatmul.mubr.bf16.vlgmr.msra.gmra.mrb[0].mxu0 %v985_v1  ;;  %635 = vmatmul.mubr.bf16.vlgmr.msra.gmra.mrb[0].mxu1 %v985_v1 }
  0x4e   : > { %583 = vmatprep.mubr.bf16.mxu0 %v1028_v32  ;;  %644 = vmatprep.mubr.bf16.mxu1 %v1028_v32 }
  0x55   : > { %584 = vmatmul.mubr.bf16.gmra.mrb[4].mxu0 %v986_v2  ;;  %645 = vmatmul.mubr.bf16.gmra.mrb[4].mxu1 %v986_v2 }
  0x56   : > { %593 = vmatprep.mubr.bf16.mxu0 %v1028_v32  ;;  %654 = vmatprep.mubr.bf16.mxu1 %v1028_v32 }
  0x5d   : > { %594 = vmatmul.mubr.bf16.gmra.mrb[8].mxu0 %v987_v3  ;;  %655 = vmatmul.mubr.bf16.gmra.mrb[8].mxu1 %v987_v3 }
 0x120   : > { %v575_v15 = vpop.f32.mrb[0].mxu0  ;;  %v636_v16 = vpop.f32.mrb[0].mxu1 }
 0x121   : > { %v576_v17 = vadd.f32 %v575_v15, %v348_v11  ;;  %v637_v18 = vadd.f32 %v636_v16, %v356_v12  ;;  %v577_v19 = vpop.f32.mrb[1].mxu0  ;;  %v638_v20 = vpop.f32.mrb[1].mxu1 }
 0x122   : > { %v578_v21 = vadd.f32 %v577_v19, %v352_v13  ;;  %v639_v22 = vadd.f32 %v638_v20, %v360_v14  ;;  %v579_v23 = vpop.f32.mrb[2].mxu0  ;;  %v640_v24 = vpop.f32.mrb[2].mxu1 }
 0x123   : > { %663 = vst [vmem:[%s1225_s25] sm:$0xff] %v576_v17  ;;  %665 = vst [vmem:[%s1225_s25 + $0x10] sm:$0xff] %v637_v18  ;;  %v580_v25 = vadd.f32 %v579_v23, %v348_v11  ;;  %v641_v26 = vadd.f32 %v640_v24, %v356_v12  ;;  %v581_v27 = vpop.f32.mrb[3].mxu0  ;;  %v642_v28 = vpop.f32.mrb[3].mxu1 }
 0x124   : > { %664 = vst [vmem:[%s1225_s25 + $0x8] sm:$0xff] %v578_v21  ;;  %666 = vst [vmem:[%s1225_s25 + $0x18] sm:$0xff] %v639_v22  ;;  %v582_v29 = vadd.f32 %v581_v27, %v352_v13  ;;  %v643_v30 = vadd.f32 %v642_v28, %v360_v14 }
 0x125   : > { %667 = vst [vmem:[%s1225_s25 + $0x20] sm:$0xff] %v580_v25  ;;  %669 = vst [vmem:[%s1225_s25 + $0x30] sm:$0xff] %v641_v26 }
 0x126   : > { %668 = vst [vmem:[%s1225_s25 + $0x28] sm:$0xff] %v582_v29  ;;  %670 = vst [vmem:[%s1225_s25 + $0x38] sm:$0xff] %v643_v30 }
 0x128   : > { %v585_v31 = vpop.f32.mrb[4].mxu0  ;;  %v646_v32 = vpop.f32.mrb[4].mxu1 }
 0x129   : > { %v586_v33 = vadd.f32 %v585_v31, %v348_v11  ;;  %v647_v34 = vadd.f32 %v646_v32, %v356_v12  ;;  %v587_v35 = vpop.f32.mrb[5].mxu0  ;;  %v648_v36 = vpop.f32.mrb[5].mxu1 }
 0x12a   : > { %v588_v37 = vadd.f32 %v587_v35, %v352_v13  ;;  %v649_v38 = vadd.f32 %v648_v36, %v360_v14  ;;  %v589_v39 = vpop.f32.mrb[6].mxu0  ;;  %v650_v40 = vpop.f32.mrb[6].mxu1  ;;  %v708_v59 = vld [vmem:[%s1225_s25] sm:$0xff] (%p1084_p6)  ;;  %v712_v61 = vld [vmem:[%s1225_s25 + $0x10] sm:$0xff] (%p1084_p6) }
 0x12b   : > { %671 = vst [vmem:[%s1225_s25 + $0x40] sm:$0xff] %v586_v33  ;;  %673 = vst [vmem:[%s1225_s25 + $0x50] sm:$0xff] %v647_v34  ;;  %v590_v41 = vadd.f32 %v589_v39, %v348_v11  ;;  %v651_v42 = vadd.f32 %v650_v40, %v356_v12  ;;  %v591_v43 = vpop.f32.mrb[7].mxu0  ;;  %v652_v44 = vpop.f32.mrb[7].mxu1  ;;  %v710_v60 = vld [vmem:[%s1225_s25 + $0x8] sm:$0xff] (%p1084_p6)  ;;  %v714_v62 = vld [vmem:[%s1225_s25 + $0x18] sm:$0xff] (%p1084_p6) }
 0x12c   : > { %672 = vst [vmem:[%s1225_s25 + $0x48] sm:$0xff] %v588_v37  ;;  %674 = vst [vmem:[%s1225_s25 + $0x58] sm:$0xff] %v649_v38  ;;  %v592_v45 = vadd.f32 %v591_v43, %v352_v13  ;;  %v653_v46 = vadd.f32 %v652_v44, %v360_v14  ;;  %v716_v63 = vld [vmem:[%s1225_s25 + $0x20] sm:$0xff] (%p1084_p6)  ;;  %v720_v1 = vld [vmem:[%s1225_s25 + $0x30] sm:$0xff] (%p1084_p6) }
 0x12d   : > { %675 = vst [vmem:[%s1225_s25 + $0x60] sm:$0xff] %v590_v41  ;;  %677 = vst [vmem:[%s1225_s25 + $0x70] sm:$0xff] %v651_v42  ;;  %v718_v0 = vld [vmem:[%s1225_s25 + $0x28] sm:$0xff] (%p1084_p6)  ;;  %v722_v2 = vld [vmem:[%s1225_s25 + $0x38] sm:$0xff] (%p1084_p6) }
 0x12e   : > { %676 = vst [vmem:[%s1225_s25 + $0x68] sm:$0xff] %v592_v45  ;;  %678 = vst [vmem:[%s1225_s25 + $0x78] sm:$0xff] %v653_v46  ;;  %689 = sbr.rel (!%p1084_p6) target bundleno = 317 (0x13d), region = 59 }
 0x12f   : > { %709 = vst [vmem:[%s1256_s28] sm:$0xff] (%p1084_p6), %v708_v59  ;;  %711 = vst [vmem:[%s1256_s28 + $0x8] sm:$0xff] (%p1084_p6), %v710_v60 }
 0x130   : > { %v595_v47 = vpop.f32.mrb[8].mxu0  ;;  %v656_v48 = vpop.f32.mrb[8].mxu1  ;;  %713 = vst [vmem:[%s1256_s28 + $0x10] sm:$0xff] (%p1084_p6), %v712_v61  ;;  %715 = vst [vmem:[%s1256_s28 + $0x18] sm:$0xff] (%p1084_p6), %v714_v62 }
 0x131   : > { %v596_v49 = vadd.f32 %v595_v47, %v348_v11  ;;  %v657_v50 = vadd.f32 %v656_v48, %v356_v12  ;;  %v597_v51 = vpop.f32.mrb[9].mxu0  ;;  %v658_v52 = vpop.f32.mrb[9].mxu1  ;;  %717 = vst [vmem:[%s1256_s28 + $0x40] sm:$0xff] (%p1084_p6), %v716_v63  ;;  %719 = vst [vmem:[%s1256_s28 + $0x48] sm:$0xff] (%p1084_p6), %v718_v0 }
 0x132   : > { %v598_v53 = vadd.f32 %v597_v51, %v352_v13  ;;  %v659_v54 = vadd.f32 %v658_v52, %v360_v14  ;;  %v599_v55 = vpop.f32.mrb[10].mxu0  ;;  %v660_v56 = vpop.f32.mrb[10].mxu1  ;;  %v724_v3 = vld [vmem:[%s1225_s25 + $0x40] sm:$0xff] (%p1084_p6)  ;;  %721 = vst [vmem:[%s1256_s28 + $0x50] sm:$0xff] (%p1084_p6), %v720_v1  ;;  %723 = vst [vmem:[%s1256_s28 + $0x58] sm:$0xff] (%p1084_p6), %v722_v2  ;;  %v728_v5 = vld [vmem:[%s1225_s25 + $0x50] sm:$0xff] (%p1084_p6) }
 0x133   : > { %679 = vst [vmem:[%s1225_s25 + $0x80] sm:$0xff] %v596_v49  ;;  %681 = vst [vmem:[%s1225_s25 + $0x90] sm:$0xff] %v657_v50  ;;  %v600_v57 = vpop.f32.mrb[11].mxu0  ;;  %v661_v58 = vpop.f32.mrb[11].mxu1  ;;  %v726_v4 = vld [vmem:[%s1225_s25 + $0x48] sm:$0xff] (%p1084_p6)  ;;  %v730_v6 = vld [vmem:[%s1225_s25 + $0x58] sm:$0xff] (%p1084_p6) }
 0x134   : > { %680 = vst [vmem:[%s1225_s25 + $0x88] sm:$0xff] %v598_v53  ;;  %682 = vst [vmem:[%s1225_s25 + $0x98] sm:$0xff] %v659_v54  ;;  %v732_v7 = vld [vmem:[%s1225_s25 + $0x60] sm:$0xff] (%p1084_p6)  ;;  %v736_v9 = vld [vmem:[%s1225_s25 + $0x70] sm:$0xff] (%p1084_p6) }
 0x135   : > { %725 = vst [vmem:[%s1256_s28 + $0x80] sm:$0xff] %v724_v3  ;;  %727 = vst [vmem:[%s1256_s28 + $0x88] sm:$0xff] %v726_v4  ;;  %v734_v8 = vld [vmem:[%s1225_s25 + $0x68] sm:$0xff]  ;;  %v738_v10 = vld [vmem:[%s1225_s25 + $0x78] sm:$0xff] }
 0x136   : > { %729 = vst [vmem:[%s1256_s28 + $0x90] sm:$0xff] %v728_v5  ;;  %731 = vst [vmem:[%s1256_s28 + $0x98] sm:$0xff] %v730_v6 }
 0x137   : > { %733 = vst [vmem:[%s1256_s28 + $0xc0] sm:$0xff] %v732_v7  ;;  %735 = vst [vmem:[%s1256_s28 + $0xc8] sm:$0xff] %v734_v8 }
 0x138   : > { %737 = vst [vmem:[%s1256_s28 + $0xd0] sm:$0xff] %v736_v9  ;;  %739 = vst [vmem:[%s1256_s28 + $0xd8] sm:$0xff] %v738_v10 }
 0x13a   : > { %v740_v11 = vld [vmem:[%s1225_s25 + $0x80] sm:$0xff]  ;;  %v744_v13 = vld [vmem:[%s1225_s25 + $0x90] sm:$0xff] }
 0x13b   : > { %v742_v12 = vld [vmem:[%s1225_s25 + $0x88] sm:$0xff]  ;;  %741 = vst [vmem:[%s1256_s28 + $0x100] sm:$0xff] %v740_v11  ;;  %v746_v14 = vld [vmem:[%s1225_s25 + $0x98] sm:$0xff]  ;;  %745 = vst [vmem:[%s1256_s28 + $0x110] sm:$0xff] %v744_v13 }
 0x13c   : > { %743 = vst [vmem:[%s1256_s28 + $0x108] sm:$0xff] %v742_v12  ;;  %747 = vst [vmem:[%s1256_s28 + $0x118] sm:$0xff] %v746_v14 }
 0x13d PF: > { %s13_s16 = sadd.s32 1, %s1026_s16   ;;  %s1315_s12 = smov %s1014_s13 }
 0x13e   : > { %p10_p12 = scmp.ge.s32.totalorder %s13_s16, 4   ;;  %s1316_s13 = smov %s1089_s22 }
 0x13f   : > { %s1317_s14 = smov %s1022_s15  ;;  %s1318_s15 = smov %s1320_s17 }
 0x140   :  { %12 = sbr.rel (!%p10_p12) target bundleno = 3 (0x3), region = 119 }

// kernel: decoder_rnn_forward.2
= control target key start
LH: loop header
LB: loop body
LE: loop exit
PB: predicated region body
PF: predicated region fallthrough
CT: control target
= control target key end

     0   :  { %s3880_s15 = smov 0   ;;  %s4746_s0 = inlined_call_operand.vmem [shape: bf16[128,128], index: 0, kind: input, shape index: {}]   ;;  %s4747_s1 = inlined_call_operand.vmem [shape: bf16[128,512], index: 1, kind: input, shape index: {}]   ;;  %s4748_s2 = inlined_call_operand.vmem [shape: f32[1,512], index: 2, kind: input, shape index: {}]   ;;  %s4749_s3 = inlined_call_operand.vmem [shape: bf16[128,512], index: 3, kind: input, shape index: {}]   ;;  %s4750_s4 = inlined_call_operand.vmem [shape: bf16[16,8,128], index: 4, kind: output, shape index: {}]  }
   0x1 LB: > { %s3222_s16 = sadd.s32 4294967295, %s3850_s15   ;;  %p3226_p0 = scmp.ge.s32.totalorder %s3850_s15, 1  ;;  %s3850_s15 = sphi %s3880_s15, %s14_s15  }
   0x2   : > { %p163_p1 = scmp.lt.s32.totalorder %s3850_s15, 3 }
   0x4   : > { %p164_p2 = pnand %p3226_p0, %p163_p1 }
   0x6   : > { %167 = sbr.rel (%p164_p2) target bundleno = 2225 (0x8b1), region = 36 }
   0xd   : > { %s3227_s17 = sshll.u32 %s3222_s16, 3  ;;  %p3231_p4 = scmp.ne.s32.totalorder %s3222_s16, 0 }
   0xe   : > { %p190_p3 = scmp.lt.s32.totalorder %s3227_s17, 15  ;;  %v3852_v0 = vmov (!%p3231_p4), 0   ;;  %v3853_v1 = vmov (!%p3231_p4), 0.0  }
   0xf   : > { %205 = sbr.rel (%p3231_p4) target bundleno = 22 (0x16), region = 40  ;;  %206 = vst [vmem:[#allocation3] sm:$0xf] (!%p3231_p4), %v3852_v0  ;;  %207 = vst [vmem:[#allocation4] sm:$0xff] (!%p3231_p4), %v3853_v1 }
  0x10   : > { %s4797_s17 = smov (!%p190_p3, %s3227_s17), 15 }
  0x11   : > { %s3228_s18 = sshll.u32 %s4797_s17, 2 }
  0x12   : > { %s3891_s21 = scalar_lea.vmem %s4746_s0, %s3228_s18  ;;  %s3896_s24 = scalar_lea.vmem %s4750_s4, %s3228_s18 }
  0x16 PF: > { %v3568_v2 = vld [vmem:[%s4747_s1 + $0x4] ss:$16 sps:$4 sm:$0xff]   ;;  %v3570_v3 = vld [vmem:[%s4747_s1 + $0xc] ss:$16 sps:$4 sm:$0xff]   ;;  %v4751_v4 = vmov 0  }
  0x17   : > { %486 = vmatprep.mubr.bf16.mxu0 %v4751_v4  ;;  %559 = vmatprep.mubr.bf16.mxu1 %v4751_v4  ;;  %v3572_v5 = vld [vmem:[%s4747_s1] ss:$16 sps:$4 sm:$0xff]   ;;  %v3573_v6 = vld [vmem:[%s4747_s1 + $0x8] ss:$16 sps:$4 sm:$0xff]   ;;  %v3574_v7 = vld [vmem:[%s4747_s1 + $0x24] ss:$16 sps:$4 sm:$0xff]  }
  0x18   : > { %454 = vmatprep.subr.bf16.mxu0 %v3568_v2  ;;  %527 = vmatprep.subr.bf16.mxu1 %v3570_v3  ;;  %v3576_v8 = vld [vmem:[%s4747_s1 + $0x2c] ss:$16 sps:$4 sm:$0xff]   ;;  %v3578_v9 = vld [vmem:[%s4747_s1 + $0x20] ss:$16 sps:$4 sm:$0xff]   ;;  %v3579_v10 = vld [vmem:[%s4747_s1 + $0x28] ss:$16 sps:$4 sm:$0xff]  }
  0x19   : > { %455 = vmatpush1.bf16.msra.mxu0 %v3572_v5  ;;  %528 = vmatpush1.bf16.msra.mxu1 %v3573_v6  ;;  %v3580_v11 = vld [vmem:[%s4747_s1 + $0x44] ss:$16 sps:$4 sm:$0xff]   ;;  %v3582_v12 = vld [vmem:[%s4747_s1 + $0x4c] ss:$16 sps:$4 sm:$0xff]   ;;  %v3584_v13 = vld [vmem:[%s4747_s1 + $0x40] ss:$16 sps:$4 sm:$0xff]  }
  0x1a   : > { %456 = vmatprep.subr.bf16.mxu0 %v3574_v7  ;;  %529 = vmatprep.subr.bf16.mxu1 %v3576_v8  ;;  %v3585_v14 = vld [vmem:[%s4747_s1 + $0x48] ss:$16 sps:$4 sm:$0xff]   ;;  %v3586_v15 = vld [vmem:[%s4747_s1 + $0x64] ss:$16 sps:$4 sm:$0xff]   ;;  %v3588_v16 = vld [vmem:[%s4747_s1 + $0x6c] ss:$16 sps:$4 sm:$0xff]  }
  0x1b   : > { %v3590_v17 = vld [vmem:[%s4747_s1 + $0x60] ss:$16 sps:$4 sm:$0xff]   ;;  %v3591_v18 = vld [vmem:[%s4747_s1 + $0x68] ss:$16 sps:$4 sm:$0xff]   ;;  %v3592_v19 = vld [vmem:[%s4747_s1 + $0x84] ss:$16 sps:$4 sm:$0xff]  }
  0x1c   : > { %v3594_v20 = vld [vmem:[%s4747_s1 + $0x8c] ss:$16 sps:$4 sm:$0xff]   ;;  %v3596_v21 = vld [vmem:[%s4747_s1 + $0x80] ss:$16 sps:$4 sm:$0xff]   ;;  %v3597_v22 = vld [vmem:[%s4747_s1 + $0x88] ss:$16 sps:$4 sm:$0xff]  }
  0x1d   : > { %457 = vmatpush1.bf16.msra.mxu0 %v3578_v9  ;;  %530 = vmatpush1.bf16.msra.mxu1 %v3579_v10  ;;  %v3598_v23 = vld [vmem:[%s4747_s1 + $0xa4] ss:$16 sps:$4 sm:$0xff]   ;;  %v3600_v24 = vld [vmem:[%s4747_s1 + $0xac] ss:$16 sps:$4 sm:$0xff]   ;;  %v3602_v25 = vld [vmem:[%s4747_s1 + $0xa0] ss:$16 sps:$4 sm:$0xff]   ;;  %v250_v9 = vlaneseq }
  0x1e   : > { %458 = vmatprep.subr.bf16.mxu0 %v3580_v11  ;;  %531 = vmatprep.subr.bf16.mxu1 %v3582_v12  ;;  %v3603_v26 = vld [vmem:[%s4747_s1 + $0xa8] ss:$16 sps:$4 sm:$0xff]   ;;  %v3604_v27 = vld [vmem:[%s4747_s1 + $0xc4] ss:$16 sps:$4 sm:$0xff]   ;;  %v3606_v28 = vld [vmem:[%s4747_s1 + $0xcc] ss:$16 sps:$4 sm:$0xff]  }
  0x1f   : > { %v3608_v29 = vld [vmem:[%s4747_s1 + $0xc0] ss:$16 sps:$4 sm:$0xff]   ;;  %v3609_v30 = vld [vmem:[%s4747_s1 + $0xc8] ss:$16 sps:$4 sm:$0xff]   ;;  %v3610_v31 = vld [vmem:[%s4747_s1 + $0xe4] ss:$16 sps:$4 sm:$0xff]  }
  0x20   : > { %v3612_v32 = vld [vmem:[%s4747_s1 + $0xec] ss:$16 sps:$4 sm:$0xff]   ;;  %v3614_v33 = vld [vmem:[%s4747_s1 + $0xe0] ss:$16 sps:$4 sm:$0xff]   ;;  %v3615_v34 = vld [vmem:[%s4747_s1 + $0xe8] ss:$16 sps:$4 sm:$0xff]  }
  0x21   : > { %459 = vmatpush1.bf16.msra.mxu0 %v3584_v13  ;;  %532 = vmatpush1.bf16.msra.mxu1 %v3585_v14  ;;  %v3999_v35 = vld [vmem:[%s4749_s3 + $0x4] ss:$16 sps:$4 sm:$0xff]   ;;  %v4004_v36 = vld [vmem:[%s4749_s3 + $0xc] ss:$16 sps:$4 sm:$0xff]   ;;  %v4010_v38 = vld [vmem:[%s4749_s3] ss:$16 sps:$4 sm:$0xff]  }
  0x22   : > { %460 = vmatprep.subr.bf16.mxu0 %v3586_v15  ;;  %533 = vmatprep.subr.bf16.mxu1 %v3588_v16  ;;  %v3616_v37 = vld [vmem:[%s3891_s21] sm:$0xff]   ;;  %v4015_v39 = vld [vmem:[%s4749_s3 + $0x8] ss:$16 sps:$4 sm:$0xff]   ;;  %v4027_v41 = vld [vmem:[%s4749_s3 + $0x2c] ss:$16 sps:$4 sm:$0xff]   ;;  %v251_v10 = vshrl.u32 %v250_v9, 7 }
  0x23   : > { %v4022_v40 = vld [vmem:[%s4749_s3 + $0x24] ss:$16 sps:$4 sm:$0xff]   ;;  %v4032_v42 = vld [vmem:[%s4749_s3 + $0x20] ss:$16 sps:$4 sm:$0xff]   ;;  %v4039_v43 = vld [vmem:[%s4749_s3 + $0x28] ss:$16 sps:$4 sm:$0xff]  }
  0x24   : > { %v4046_v44 = vld [vmem:[%s4749_s3 + $0x44] ss:$16 sps:$4 sm:$0xff]   ;;  %v4051_v45 = vld [vmem:[%s4749_s3 + $0x4c] ss:$16 sps:$4 sm:$0xff]   ;;  %v4059_v47 = vld [vmem:[%s4749_s3 + $0x40] ss:$16 sps:$4 sm:$0xff]  }
  0x25   : > { %461 = vmatpush1.bf16.msra.mxu0 %v3590_v17  ;;  %534 = vmatpush1.bf16.msra.mxu1 %v3591_v18  ;;  %v3629_v46 = vld [vmem:[%s3891_s21 + $0x8] sm:$0xff]   ;;  %v4071_v49 = vld [vmem:[%s4749_s3 + $0x64] ss:$16 sps:$4 sm:$0xff]   ;;  %v4083_v51 = vld [vmem:[%s4749_s3 + $0x60] ss:$16 sps:$4 sm:$0xff]   ;;  %v260_v11 = vsub.s32 2, %v251_v10 }
  0x26   : > { %462 = vmatprep.subr.bf16.mxu0 %v3592_v19  ;;  %535 = vmatprep.subr.bf16.mxu1 %v3594_v20  ;;  %v4064_v48 = vld [vmem:[%s4749_s3 + $0x48] ss:$16 sps:$4 sm:$0xff]   ;;  %v4078_v50 = vld [vmem:[%s4749_s3 + $0x6c] ss:$16 sps:$4 sm:$0xff]   ;;  %v4095_v53 = vld [vmem:[%s4749_s3 + $0x84] ss:$16 sps:$4 sm:$0xff]  }
  0x27   : > { %v4088_v52 = vld [vmem:[%s4749_s3 + $0x68] ss:$16 sps:$4 sm:$0xff]   ;;  %v4102_v54 = vld [vmem:[%s4749_s3 + $0x8c] ss:$16 sps:$4 sm:$0xff]   ;;  %v3642_v55 = vld [vmem:[%s3891_s21 + $0x10] sm:$0xff]   ;;  %v264_v12 = vsub.s32 3, %v251_v10 }
  0x28   : > { %v4110_v56 = vld [vmem:[%s4749_s3 + $0x80] ss:$16 sps:$4 sm:$0xff]   ;;  %v4115_v57 = vld [vmem:[%s4749_s3 + $0x88] ss:$16 sps:$4 sm:$0xff]   ;;  %v4120_v58 = vld [vmem:[%s4749_s3 + $0xa4] ss:$16 sps:$4 sm:$0xff]  }
  0x29   : > { %463 = vmatpush1.bf16.msra.mxu0 %v3596_v21  ;;  %536 = vmatpush1.bf16.msra.mxu1 %v3597_v22  ;;  %v4125_v59 = vld [vmem:[%s4749_s3 + $0xac] ss:$16 sps:$4 sm:$0xff]   ;;  %v4134_v60 = vld [vmem:[%s4749_s3 + $0xa0] ss:$16 sps:$4 sm:$0xff]   ;;  %v4139_v61 = vld [vmem:[%s4749_s3 + $0xa8] ss:$16 sps:$4 sm:$0xff]  }
  0x2a   : > { %464 = vmatprep.subr.bf16.mxu0 %v3598_v23  ;;  %537 = vmatprep.subr.bf16.mxu1 %v3600_v24  ;;  %v4144_v62 = vld [vmem:[%s4749_s3 + $0xc4] ss:$16 sps:$4 sm:$0xff]   ;;  %v4149_v63 = vld [vmem:[%s4749_s3 + $0xcc] ss:$16 sps:$4 sm:$0xff]   ;;  %v4161_v1 = vld [vmem:[%s4749_s3 + $0xc0] ss:$16 sps:$4 sm:$0xff]  }
  0x2b   : > { %v3655_v0 = vld [vmem:[%s3891_s21 + $0x18] sm:$0xff]   ;;  %v4171_v3 = vld [vmem:[%s4749_s3 + $0xe4] ss:$16 sps:$4 sm:$0xff]   ;;  %v4187_v6 = vld [vmem:[%s4749_s3 + $0xe0] ss:$16 sps:$4 sm:$0xff]   ;;  %v252_v13 = vsub.s32 0, %v251_v10 }
  0x2c   : > { %v4166_v2 = vld [vmem:[%s4749_s3 + $0xc8] ss:$16 sps:$4 sm:$0xff]   ;;  %v4176_v5 = vld [vmem:[%s4749_s3 + $0xec] ss:$16 sps:$4 sm:$0xff]   ;;  %v639_v8 = vld [vmem:[#allocation3] sm:$0xf] }
  0x2d   : > { %465 = vmatpush1.bf16.msra.mxu0 %v3602_v25  ;;  %538 = vmatpush1.bf16.msra.mxu1 %v3603_v26  ;;  %v4192_v7 = vld [vmem:[%s4749_s3 + $0xe8] ss:$16 sps:$4 sm:$0xff]   ;;  %v248_v14 = vld [vmem:[%s4748_s2] sm:$0xf]  ;;  %v256_v15 = vsub.s32 1, %v251_v10 }
  0x2e   : > { %466 = vmatprep.subr.bf16.mxu0 %v3604_v27  ;;  %539 = vmatprep.subr.bf16.mxu1 %v3606_v28  ;;  %v4239_v16 = vrot.slane %v248_v14, %v260_v11  ;;  %v4245_v19 = vrot.slane %v248_v14, %v264_v12  ;;  %v253_v20 = vrot.slane %v248_v14, %v252_v13 }
  0x2f   : > { %v257_v23 = vrot.slane %v248_v14, %v256_v15 }
  0x31   : > { %467 = vmatpush1.bf16.msra.mxu0 %v3608_v29  ;;  %540 = vmatpush1.bf16.msra.mxu1 %v3609_v30 }
  0x32   : > { %468 = vmatprep.subr.bf16.mxu0 %v3610_v31  ;;  %541 = vmatprep.subr.bf16.mxu1 %v3612_v32 }
  0x35   : > { %469 = vmatpush1.bf16.msra.mxu0 %v3614_v33  ;;  %542 = vmatpush1.bf16.msra.mxu1 %v3615_v34 }
  0x36   : > { %832 = vmatprep.subr.bf16.mxu0 %v3999_v35  ;;  %873 = vmatprep.subr.bf16.mxu1 %v4004_v36 }
  0x38   : > { %487 = vmatmul.mubr.bf16.vlgmr.msra.gmra.mrb[0].mxu0 %v3616_v37  ;;  %560 = vmatmul.mubr.bf16.vlgmr.msra.gmra.mrb[0].mxu1 %v3616_v37 }
  0x39   : > { %833 = vmatpush1.bf16.msra.mxu0 %v4010_v38  ;;  %874 = vmatpush1.bf16.msra.mxu1 %v4015_v39 }
  0x3a   : > { %834 = vmatprep.subr.bf16.mxu0 %v4022_v40  ;;  %875 = vmatprep.subr.bf16.mxu1 %v4027_v41 }
  0x3b   : > { %496 = vmatprep.mubr.bf16.mxu0 %v4751_v4  ;;  %569 = vmatprep.mubr.bf16.mxu1 %v4751_v4 }
  0x3d   : > { %835 = vmatpush1.bf16.msra.mxu0 %v4032_v42  ;;  %876 = vmatpush1.bf16.msra.mxu1 %v4039_v43 }
  0x3e   : > { %836 = vmatprep.subr.bf16.mxu0 %v4046_v44  ;;  %877 = vmatprep.subr.bf16.mxu1 %v4051_v45 }
  0x40   : > { %497 = vmatmul.mubr.bf16.gmra.mrb[4].mxu0 %v3629_v46  ;;  %570 = vmatmul.mubr.bf16.gmra.mrb[4].mxu1 %v3629_v46 }
  0x41   : > { %837 = vmatpush1.bf16.msra.mxu0 %v4059_v47  ;;  %878 = vmatpush1.bf16.msra.mxu1 %v4064_v48 }
  0x42   : > { %838 = vmatprep.subr.bf16.mxu0 %v4071_v49  ;;  %879 = vmatprep.subr.bf16.mxu1 %v4078_v50 }
  0x43   : > { %506 = vmatprep.mubr.bf16.mxu0 %v4751_v4  ;;  %579 = vmatprep.mubr.bf16.mxu1 %v4751_v4 }
  0x45   : > { %839 = vmatpush1.bf16.msra.mxu0 %v4083_v51  ;;  %880 = vmatpush1.bf16.msra.mxu1 %v4088_v52 }
  0x46   : > { %840 = vmatprep.subr.bf16.mxu0 %v4095_v53  ;;  %881 = vmatprep.subr.bf16.mxu1 %v4102_v54 }
  0x48   : > { %507 = vmatmul.mubr.bf16.gmra.mrb[8].mxu0 %v3642_v55  ;;  %580 = vmatmul.mubr.bf16.gmra.mrb[8].mxu1 %v3642_v55 }
  0x49   : > { %841 = vmatpush1.bf16.msra.mxu0 %v4110_v56  ;;  %882 = vmatpush1.bf16.msra.mxu1 %v4115_v57 }
  0x4a   : > { %842 = vmatprep.subr.bf16.mxu0 %v4120_v58  ;;  %883 = vmatprep.subr.bf16.mxu1 %v4125_v59 }
  0x4b   : > { %516 = vmatprep.mubr.bf16.mxu0 %v4751_v4  ;;  %589 = vmatprep.mubr.bf16.mxu1 %v4751_v4 }
  0x4d   : > { %843 = vmatpush1.bf16.msra.mxu0 %v4134_v60  ;;  %884 = vmatpush1.bf16.msra.mxu1 %v4139_v61 }
  0x4e   : > { %844 = vmatprep.subr.bf16.mxu0 %v4144_v62  ;;  %885 = vmatprep.subr.bf16.mxu1 %v4149_v63 }
  0x50   : > { %517 = vmatmul.mubr.bf16.gmra.mrb[12].mxu0 %v3655_v0  ;;  %590 = vmatmul.mubr.bf16.gmra.mrb[12].mxu1 %v3655_v0 }
  0x51   : > { %845 = vmatpush1.bf16.msra.mxu0 %v4161_v1  ;;  %886 = vmatpush1.bf16.msra.mxu1 %v4166_v2 }
  0x52   : > { %846 = vmatprep.subr.bf16.mxu0 %v4171_v3  ;;  %887 = vmatprep.subr.bf16.mxu1 %v4176_v5 }
  0x53   : > { %864 = vmatprep.mubr.bf16.mxu0 %v4751_v4  ;;  %905 = vmatprep.mubr.bf16.mxu1 %v4751_v4 }
  0x55   : > { %847 = vmatpush1.bf16.msra.mxu0 %v4187_v6  ;;  %888 = vmatpush1.bf16.msra.mxu1 %v4192_v7 }
  0x56   : > { %1147 = vmatprep.subr.bf16.mxu0 %v3999_v35  ;;  %1188 = vmatprep.subr.bf16.mxu1 %v4004_v36 }
  0x58   : > { %865 = vmatmul.mubr.bf16.vlgmr.msra.gmra.mrb[16].mxu0 %v639_v8  ;;  %906 = vmatmul.mubr.bf16.vlgmr.msra.gmra.mrb[16].mxu1 %v639_v8 }
  0x59   : > { %1148 = vmatpush1.bf16.msra.mxu0 %v4010_v38  ;;  %1189 = vmatpush1.bf16.msra.mxu1 %v4015_v39 }
  0x5a   : > { %1149 = vmatprep.subr.bf16.mxu0 %v4022_v40  ;;  %1190 = vmatprep.subr.bf16.mxu1 %v4027_v41 }
  0x5b   : > { %1179 = vmatprep.mubr.bf16.mxu0 %v4751_v4  ;;  %1220 = vmatprep.mubr.bf16.mxu1 %v4751_v4 }
  0x5d   : > { %1150 = vmatpush1.bf16.msra.mxu0 %v4032_v42  ;;  %1191 = vmatpush1.bf16.msra.mxu1 %v4039_v43 }
  0x5e   : > { %1151 = vmatprep.subr.bf16.mxu0 %v4046_v44  ;;  %1192 = vmatprep.subr.bf16.mxu1 %v4051_v45 }
  0x61   : > { %1152 = vmatpush1.bf16.msra.mxu0 %v4059_v47  ;;  %1193 = vmatpush1.bf16.msra.mxu1 %v4064_v48 }
  0x62   : > { %1153 = vmatprep.subr.bf16.mxu0 %v4071_v49  ;;  %1194 = vmatprep.subr.bf16.mxu1 %v4078_v50 }
  0x65   : > { %1154 = vmatpush1.bf16.msra.mxu0 %v4083_v51  ;;  %1195 = vmatpush1.bf16.msra.mxu1 %v4088_v52 }
  0x66   : > { %1155 = vmatprep.subr.bf16.mxu0 %v4095_v53  ;;  %1196 = vmatprep.subr.bf16.mxu1 %v4102_v54 }
  0x69   : > { %1156 = vmatpush1.bf16.msra.mxu0 %v4110_v56  ;;  %1197 = vmatpush1.bf16.msra.mxu1 %v4115_v57 }
  0x6a   : > { %1157 = vmatprep.subr.bf16.mxu0 %v4120_v58  ;;  %1198 = vmatprep.subr.bf16.mxu1 %v4125_v59 }
  0x6d   : > { %1158 = vmatpush1.bf16.msra.mxu0 %v4134_v60  ;;  %1199 = vmatpush1.bf16.msra.mxu1 %v4139_v61 }
  0x6e   : > { %1159 = vmatprep.subr.bf16.mxu0 %v4144_v62  ;;  %1200 = vmatprep.subr.bf16.mxu1 %v4149_v63 }
  0x71   : > { %1160 = vmatpush1.bf16.msra.mxu0 %v4161_v1  ;;  %1201 = vmatpush1.bf16.msra.mxu1 %v4166_v2 }
  0x72   : > { %1161 = vmatprep.subr.bf16.mxu0 %v4171_v3  ;;  %1202 = vmatprep.subr.bf16.mxu1 %v4176_v5 }
  0x75   : > { %1162 = vmatpush1.bf16.msra.mxu0 %v4187_v6  ;;  %1203 = vmatpush1.bf16.msra.mxu1 %v4192_v7 }
  0x76   : > { %1463 = vmatprep.subr.bf16.mxu0 %v3999_v35  ;;  %1504 = vmatprep.subr.bf16.mxu1 %v4004_v36 }
 0x10b   : > { %v4241_v17 = vpop.f32.mrb[0].mxu0  ;;  %v4243_v18 = vpop.f32.mrb[0].mxu1 }
 0x10c   : > { %v490_v21 = vpop.f32.mrb[1].mxu0  ;;  %v563_v22 = vpop.f32.mrb[1].mxu1 }
 0x10d   : > { %v492_v24 = vpop.f32.mrb[2].mxu0  ;;  %v565_v25 = vpop.f32.mrb[2].mxu1 }
 0x10e   : > { %v4247_v26 = vadd.f32 %v492_v24, %v253_v20  ;;  %v494_v27 = vpop.f32.mrb[3].mxu0  ;;  %v4250_v28 = vadd.f32 %v565_v25, %v4239_v16  ;;  %v567_v29 = vpop.f32.mrb[3].mxu1 }
 0x10f   : > { %v4252_v30 = vadd.f32 %v494_v27, %v257_v23  ;;  %v4255_v31 = vadd.f32 %v567_v29, %v4245_v19 }
 0x113   : > { %v498_v32 = vpop.f32.mrb[4].mxu0  ;;  %v571_v33 = vpop.f32.mrb[4].mxu1 }
 0x114   : > { %v4257_v34 = vadd.f32 %v498_v32, %v253_v20  ;;  %v500_v37 = vpop.f32.mrb[5].mxu0  ;;  %v4260_v46 = vadd.f32 %v571_v33, %v4239_v16  ;;  %v573_v55 = vpop.f32.mrb[5].mxu1 }
 0x115   : > { %v4262_v0 = vadd.f32 %v500_v37, %v257_v23  ;;  %v502_v8 = vpop.f32.mrb[6].mxu0  ;;  %v4265_v9 = vadd.f32 %v573_v55, %v4245_v19  ;;  %v575_v10 = vpop.f32.mrb[6].mxu1 }
 0x116   : > { %v4267_v11 = vadd.f32 %v502_v8, %v253_v20  ;;  %v504_v12 = vpop.f32.mrb[7].mxu0  ;;  %v4270_v13 = vadd.f32 %v575_v10, %v4239_v16  ;;  %v577_v14 = vpop.f32.mrb[7].mxu1 }
 0x117   : > { %4753 = vst [vmem:[#allocation5_spill] sm:$0xff] %v4265_v9  ;;  %v4272_v15 = vadd.f32 %v504_v12, %v257_v23  ;;  %v4275_v24 = vadd.f32 %v577_v14, %v4245_v19 }
 0x118   : > { %4754 = vst [vmem:[#allocation6_spill] sm:$0xff] %v4267_v11  ;;  %4755 = vst [vmem:[#allocation7_spill] sm:$0xff] %v4270_v13 }
 0x119   : > { %4756 = vst [vmem:[#allocation8_spill] sm:$0xff] %v4272_v15  ;;  %4757 = vst [vmem:[#allocation9_spill] sm:$0xff] %v4275_v24 }
 0x11b   : > { %v508_v25 = vpop.f32.mrb[8].mxu0  ;;  %v581_v27 = vpop.f32.mrb[8].mxu1 }
 0x11c   : > { %v4277_v29 = vadd.f32 %v508_v25, %v253_v20  ;;  %v510_v32 = vpop.f32.mrb[9].mxu0  ;;  %v4280_v33 = vadd.f32 %v581_v27, %v4239_v16  ;;  %v583_v37 = vpop.f32.mrb[9].mxu1 }
 0x11d   : > { %v4282_v55 = vadd.f32 %v510_v32, %v257_v23  ;;  %v512_v8 = vpop.f32.mrb[10].mxu0  ;;  %v4285_v10 = vadd.f32 %v583_v37, %v4245_v19  ;;  %v585_v12 = vpop.f32.mrb[10].mxu1 }
 0x11e   : > { %4758 = vst [vmem:[#allocation10_spill] sm:$0xff] %v4277_v29  ;;  %4759 = vst [vmem:[#allocation11_spill] sm:$0xff] %v4280_v33  ;;  %v4287_v4 = vadd.f32 %v512_v8, %v253_v20  ;;  %v514_v14 = vpop.f32.mrb[11].mxu0  ;;  %v4290_v24 = vadd.f32 %v585_v12, %v4239_v16  ;;  %v587_v25 = vpop.f32.mrb[11].mxu1 }
 0x11f   : > { %4760 = vst [vmem:[#allocation12_spill] sm:$0xff] %v4282_v55  ;;  %4761 = vst [vmem:[#allocation13_spill] sm:$0xff] %v4285_v10  ;;  %v4292_v29 = vadd.f32 %v514_v14, %v257_v23  ;;  %v4295_v27 = vadd.f32 %v587_v25, %v4245_v19 }
 0x120   : > { %4762 = vst [vmem:[#allocation14_spill] sm:$0xff] %v4287_v4  ;;  %4763 = vst [vmem:[#allocation15_spill] sm:$0xff] %v4290_v24 }
 0x121   : > { %4764 = vst [vmem:[#allocation16_spill] sm:$0xff] %v4292_v29  ;;  %4765 = vst [vmem:[#allocation17_spill] sm:$0xff] %v4295_v27 }
 0x123   : > { %v518_v33 = vpop.f32.mrb[12].mxu0  ;;  %v591_v32 = vpop.f32.mrb[12].mxu1 }
 0x124   : > { %v4297_v55 = vadd.f32 %v518_v33, %v253_v20  ;;  %v520_v15 = vpop.f32.mrb[13].mxu0  ;;  %v4300_v37 = vadd.f32 %v591_v32, %v4239_v16  ;;  %v593_v8 = vpop.f32.mrb[13].mxu1 }
 0x125   : > { %v4302_v4 = vadd.f32 %v520_v15, %v257_v23  ;;  %v522_v10 = vpop.f32.mrb[14].mxu0  ;;  %v4305_v12 = vadd.f32 %v593_v8, %v4245_v19  ;;  %v595_v14 = vpop.f32.mrb[14].mxu1  ;;  %v489_v15 = vadd.f32 %v4241_v17, %v253_v20  ;;  %v491_v8 = vadd.f32 %v490_v21, %v257_v23 }
 0x126   : > { %4766 = vst [vmem:[#allocation18_spill] sm:$0xff] %v4297_v55  ;;  %4767 = vst [vmem:[#allocation19_spill] sm:$0xff] %v4300_v37  ;;  %v4307_v29 = vadd.f32 %v522_v10, %v253_v20  ;;  %v524_v25 = vpop.f32.mrb[15].mxu0  ;;  %v4310_v27 = vadd.f32 %v595_v14, %v4239_v16  ;;  %v597_v33 = vpop.f32.mrb[15].mxu1 }
 0x127   : > { %4768 = vst [vmem:[#allocation20_spill] sm:$0xff] %v4302_v4  ;;  %4769 = vst [vmem:[#allocation21_spill] sm:$0xff] %v4305_v12  ;;  %v4312_v55 = vadd.f32 %v524_v25, %v257_v23  ;;  %v4315_v32 = vadd.f32 %v597_v33, %v4245_v19  ;;  %v562_v4 = vadd.f32 %v4243_v18, %v4239_v16  ;;  %v937_v23 = vld [vmem:[#allocation4] sm:$0xff] }
 0x128   : > { %4770 = vst [vmem:[#allocation22_spill] sm:$0xff] %v4307_v29  ;;  %4771 = vst [vmem:[#allocation23_spill] sm:$0xff] %v4310_v27  ;;  %v564_v12 = vadd.f32 %v563_v22, %v4245_v19 }
 0x129   : > { %4772 = vst [vmem:[#allocation24_spill] sm:$0xff] %v4312_v55  ;;  %4773 = vst [vmem:[#allocation25_spill] sm:$0xff] %v4315_v32 }
 0x12b   : > { %v866_v10 = vpop.f32.mrb[16].mxu0  ;;  %v907_v29 = vpop.f32.mrb[16].mxu1 }
 0x12c   : > { %v914_v37 = vadd.f32 %v866_v10, %v489_v15  ;;  %v916_v24 = vadd.f32 %v907_v29, %v562_v4  ;;  %v868_v14 = vpop.f32.mrb[17].mxu0  ;;  %v909_v27 = vpop.f32.mrb[17].mxu1 }
 0x12d   : > { %v915_v13 = vadd.f32 %v868_v14, %v491_v8  ;;  %v917_v25 = vadd.f32 %v909_v27, %v564_v12  ;;  %v870_v55 = vpop.f32.mrb[18].mxu0  ;;  %v911_v11 = vpop.f32.mrb[18].mxu1  ;;  %v4774_v8 = vmov 0  }
 0x12e   : > { %v3300_v33 = vmul.f32 -1.442695, %v914_v37  ;;  %v871_v32 = vpop.f32.mrb[19].mxu0  ;;  %v912_v9 = vpop.f32.mrb[19].mxu1 }
 0x12f   : > { %v3301_v17 = vmul.f32 -1.442695, %v915_v13  ;;  %v3302_v16 = vmul.f32 -1.442695, %v917_v25 }
 0x130   : > { %3716 = vpow2.f32 %v3300_v33 }
 0x131   : > { %3718 = vpow2.f32 %v3301_v17 }
 0x132   : > { %3720 = vpow2.f32 %v3302_v16 }
 0x133   : > { %3722 = vtanh.f32 %v916_v24 }
 0x13a   : > { %v3717_v18 = vpop.eup %3716 }
 0x13b   : > { %v3719_v20 = vpop.eup %3718  ;;  %v921_v19 = vadd.f32 1.0, %v3717_v18 }
 0x13c   : > { %v927_v21 = vadd.f32 1.0, %v3719_v20  ;;  %v3721_v4 = vpop.eup %3720 }
 0x13d   : > { %3724 = vrcp.f32 %v921_v19  ;;  %v3723_v22 = vpop.eup %3722  ;;  %v934_v9 = vadd.f32 1.0, %v3721_v4 }
 0x13e   : > { %3726 = vrcp.f32 %v927_v21 }
 0x13f   : > { %3728 = vrcp.f32 %v934_v9 }
 0x147   : > { %v3725_v11 = vpop.eup %3724 }
 0x148   : > { %v3727_v29 = vpop.eup %3726  ;;  %v939_v55 = vmul.f32 %v3725_v11, %v3723_v22 }
 0x149   : > { %v938_v13 = vmul.f32 %v3727_v29, %v937_v23  ;;  %v3729_v37 = vpop.eup %3728 }
 0x14b   : > { %v4321_v27 = vadd.f32 %v939_v55, %v938_v13 }
 0x14d   : > { %3730 = vtanh.f32 %v4321_v27 }
 0x157   : > { %v3731_v12 = vpop.eup %3730 }
 0x158   : > { %v942_v24 = vmul.f32 %v3731_v12, %v3729_v37 }
 0x15a   : > { %v943_v32 = vpack.c.bf16 %v942_v24, %v942_v24 }
 0x15c   : > { %945 = vst [vmem:[#allocation3] sm:$0xf] %v943_v32  ;;  %946 = vst [vmem:[%s3896_s24] sm:$0xf] %v943_v32 }
 0x163   : > { %v954_v15 = vld [vmem:[#allocation3] sm:$0xf] }
 0x164   : > { %1180 = vmatmul.mubr.bf16.vlgmr.msra.gmra.mrb[20].mxu0 %v954_v15  ;;  %1221 = vmatmul.mubr.bf16.vlgmr.msra.gmra.mrb[20].mxu1 %v954_v15 }
 0x165   : > { %1464 = vmatpush1.bf16.msra.mxu0 %v4010_v38  ;;  %1505 = vmatpush1.bf16.msra.mxu1 %v4015_v39 }
 0x166   : > { %1465 = vmatprep.subr.bf16.mxu0 %v4022_v40  ;;  %1506 = vmatprep.subr.bf16.mxu1 %v4027_v41 }
 0x167   : > { %1495 = vmatprep.mubr.bf16.mxu0 %v4774_v8  ;;  %1536 = vmatprep.mubr.bf16.mxu1 %v4774_v8 }
 0x169   : > { %1466 = vmatpush1.bf16.msra.mxu0 %v4032_v42  ;;  %1507 = vmatpush1.bf16.msra.mxu1 %v4039_v43 }
 0x16a   : > { %1467 = vmatprep.subr.bf16.mxu0 %v4046_v44  ;;  %1508 = vmatprep.subr.bf16.mxu1 %v4051_v45 }
 0x16d   : > { %1468 = vmatpush1.bf16.msra.mxu0 %v4059_v47  ;;  %1509 = vmatpush1.bf16.msra.mxu1 %v4064_v48 }
 0x16e   : > { %1469 = vmatprep.subr.bf16.mxu0 %v4071_v49  ;;  %1510 = vmatprep.subr.bf16.mxu1 %v4078_v50 }
 0x171   : > { %1470 = vmatpush1.bf16.msra.mxu0 %v4083_v51  ;;  %1511 = vmatpush1.bf16.msra.mxu1 %v4088_v52 }
 0x172   : > { %1471 = vmatprep.subr.bf16.mxu0 %v4095_v53  ;;  %1512 = vmatprep.subr.bf16.mxu1 %v4102_v54 }
 0x175   : > { %1472 = vmatpush1.bf16.msra.mxu0 %v4110_v56  ;;  %1513 = vmatpush1.bf16.msra.mxu1 %v4115_v57 }
 0x176   : > { %1473 = vmatprep.subr.bf16.mxu0 %v4120_v58  ;;  %1514 = vmatprep.subr.bf16.mxu1 %v4125_v59 }
 0x179   : > { %1474 = vmatpush1.bf16.msra.mxu0 %v4134_v60  ;;  %1515 = vmatpush1.bf16.msra.mxu1 %v4139_v61 }
 0x17a   : > { %1475 = vmatprep.subr.bf16.mxu0 %v4144_v62  ;;  %1516 = vmatprep.subr.bf16.mxu1 %v4149_v63 }
 0x17d   : > { %1476 = vmatpush1.bf16.msra.mxu0 %v4161_v1  ;;  %1517 = vmatpush1.bf16.msra.mxu1 %v4166_v2 }
 0x17e   : > { %1477 = vmatprep.subr.bf16.mxu0 %v4171_v3  ;;  %1518 = vmatprep.subr.bf16.mxu1 %v4176_v5 }
 0x181   : > { %1478 = vmatpush1.bf16.msra.mxu0 %v4187_v6  ;;  %1519 = vmatpush1.bf16.msra.mxu1 %v4192_v7 }
 0x182   : > { %1779 = vmatprep.subr.bf16.mxu0 %v3999_v35  ;;  %1820 = vmatprep.subr.bf16.mxu1 %v4004_v36 }
 0x237   : > { %v1181_v10 = vpop.f32.mrb[20].mxu0  ;;  %v1222_v14 = vpop.f32.mrb[20].mxu1 }
 0x238   : > { %v1229_v25 = vadd.f32 %v1181_v10, %v4247_v26  ;;  %v1231_v33 = vadd.f32 %v1222_v14, %v4250_v28  ;;  %v1183_v17 = vpop.f32.mrb[21].mxu0  ;;  %v1224_v16 = vpop.f32.mrb[21].mxu1 }
 0x239   : > { %v1230_v18 = vadd.f32 %v1183_v17, %v4252_v30  ;;  %v1232_v20 = vadd.f32 %v1224_v16, %v4255_v31  ;;  %v1185_v19 = vpop.f32.mrb[22].mxu0  ;;  %v1226_v21 = vpop.f32.mrb[22].mxu1  ;;  %v4424_v17 = vld [vmem:[%s4749_s3] ss:$16 sps:$4 sm:$0xff]   ;;  %v4429_v16 = vld [vmem:[%s4749_s3 + $0x8] ss:$16 sps:$4 sm:$0xff]  }
 0x23a   : > { %v3335_v4 = vmul.f32 -1.442695, %v1229_v25  ;;  %v1186_v22 = vpop.f32.mrb[23].mxu0  ;;  %v1227_v23 = vpop.f32.mrb[23].mxu1  ;;  %v4448_v19 = vld [vmem:[%s4749_s3 + $0x20] ss:$16 sps:$4 sm:$0xff]  }
 0x23b   : > { %v3336_v35 = vmul.f32 -1.442695, %v1230_v18  ;;  %v3337_v36 = vmul.f32 -1.442695, %v1232_v20  ;;  %v4438_v18 = vld [vmem:[%s4749_s3 + $0x24] ss:$16 sps:$4 sm:$0xff]  }
 0x23c   : > { %3732 = vpow2.f32 %v3335_v4  ;;  %v4443_v20 = vld [vmem:[%s4749_s3 + $0x2c] ss:$16 sps:$4 sm:$0xff]   ;;  %v4453_v21 = vld [vmem:[%s4749_s3 + $0x28] ss:$16 sps:$4 sm:$0xff]   ;;  %v4462_v4 = vld [vmem:[%s4749_s3 + $0x44] ss:$16 sps:$4 sm:$0xff]  }
 0x23d   : > { %3734 = vpow2.f32 %v3336_v35  ;;  %v4467_v22 = vld [vmem:[%s4749_s3 + $0x4c] ss:$16 sps:$4 sm:$0xff]   ;;  %v4472_v23 = vld [vmem:[%s4749_s3 + $0x40] ss:$16 sps:$4 sm:$0xff]   ;;  %v4477_v35 = vld [vmem:[%s4749_s3 + $0x48] ss:$16 sps:$4 sm:$0xff]  }
 0x23e   : > { %3736 = vpow2.f32 %v3337_v36  ;;  %v4486_v36 = vld [vmem:[%s4749_s3 + $0x64] ss:$16 sps:$4 sm:$0xff]  }
 0x23f   : > { %3738 = vtanh.f32 %v1231_v33  ;;  %v4419_v33 = vld [vmem:[%s4749_s3 + $0xc] ss:$16 sps:$4 sm:$0xff]  }
 0x246   : > { %v3733_v11 = vpop.eup %3732 }
 0x247   : > { %v3735_v29 = vpop.eup %3734  ;;  %v1236_v26 = vadd.f32 1.0, %v3733_v11  ;;  %v4491_v11 = vld [vmem:[%s4749_s3 + $0x6c] ss:$16 sps:$4 sm:$0xff]  }
 0x248   : > { %v1242_v28 = vadd.f32 1.0, %v3735_v29  ;;  %v3737_v30 = vpop.eup %3736  ;;  %v4496_v29 = vld [vmem:[%s4749_s3 + $0x60] ss:$16 sps:$4 sm:$0xff]  }
 0x249   : > { %3740 = vrcp.f32 %v1236_v26  ;;  %v3739_v31 = vpop.eup %3738  ;;  %v1249_v37 = vadd.f32 1.0, %v3737_v30  ;;  %v4501_v26 = vld [vmem:[%s4749_s3 + $0x68] ss:$16 sps:$4 sm:$0xff]   ;;  %v4515_v30 = vld [vmem:[%s4749_s3 + $0x8c] ss:$16 sps:$4 sm:$0xff]  }
 0x24a   : > { %3742 = vrcp.f32 %v1242_v28  ;;  %v4510_v28 = vld [vmem:[%s4749_s3 + $0x84] ss:$16 sps:$4 sm:$0xff]  }
 0x24b   : > { %3744 = vrcp.f32 %v1249_v37  ;;  %v4544_v37 = vld [vmem:[%s4749_s3 + $0xa0] ss:$16 sps:$4 sm:$0xff]  }
 0x253   : > { %v3741_v55 = vpop.eup %3740 }
 0x254   : > { %v3743_v9 = vpop.eup %3742  ;;  %v1254_v13 = vmul.f32 %v3741_v55, %v3739_v31  ;;  %v4520_v31 = vld [vmem:[%s4749_s3 + $0x80] ss:$16 sps:$4 sm:$0xff]   ;;  %v4525_v55 = vld [vmem:[%s4749_s3 + $0x88] ss:$16 sps:$4 sm:$0xff]  }
 0x255   : > { %v1253_v12 = vmul.f32 %v3743_v9, %v4321_v27  ;;  %v3745_v32 = vpop.eup %3744  ;;  %v4414_v27 = vld [vmem:[%s4749_s3 + $0x4] ss:$16 sps:$4 sm:$0xff]  }
 0x256   : > { %v4534_v9 = vld [vmem:[%s4749_s3 + $0xa4] ss:$16 sps:$4 sm:$0xff]  }
 0x257   : > { %v4364_v24 = vadd.f32 %v1254_v13, %v1253_v12  ;;  %v4539_v13 = vld [vmem:[%s4749_s3 + $0xac] ss:$16 sps:$4 sm:$0xff]   ;;  %v4549_v12 = vld [vmem:[%s4749_s3 + $0xa8] ss:$16 sps:$4 sm:$0xff]  }
 0x259   : > { %3746 = vtanh.f32 %v4364_v24 }
 0x263   : > { %v3747_v15 = vpop.eup %3746 }
 0x264   : > { %v1257_v10 = vmul.f32 %v3747_v15, %v3745_v32  ;;  %v4563_v32 = vld [vmem:[%s4749_s3 + $0xcc] ss:$16 sps:$4 sm:$0xff]   ;;  %v4568_v15 = vld [vmem:[%s4749_s3 + $0xc0] ss:$16 sps:$4 sm:$0xff]  }
 0x266   : > { %v1258_v14 = vpack.c.bf16 %v1257_v10, %v1257_v10  ;;  %v4573_v10 = vld [vmem:[%s4749_s3 + $0xc8] ss:$16 sps:$4 sm:$0xff]  }
 0x268   : > { %1260 = vst [vmem:[#allocation3] sm:$0xf] %v1258_v14  ;;  %3338 = vst [vmem:[%s3896_s24 + $0x4] sm:$0xf] %v1258_v14  ;;  %v4580_v14 = vld [vmem:[%s4749_s3 + $0xe4] ss:$16 sps:$4 sm:$0xff]  }
 0x26f   : > { %v1270_v25 = vld [vmem:[#allocation3] sm:$0xf] }
 0x270   : > { %1496 = vmatmul.mubr.bf16.vlgmr.msra.gmra.mrb[24].mxu0 %v1270_v25  ;;  %1537 = vmatmul.mubr.bf16.vlgmr.msra.gmra.mrb[24].mxu1 %v1270_v25  ;;  %v4585_v25 = vld [vmem:[%s4749_s3 + $0xec] ss:$16 sps:$4 sm:$0xff]  }
 0x271   : > { %1780 = vmatpush1.bf16.msra.mxu0 %v4010_v38  ;;  %1821 = vmatpush1.bf16.msra.mxu1 %v4015_v39 }
 0x272   : > { %1781 = vmatprep.subr.bf16.mxu0 %v4022_v40  ;;  %1822 = vmatprep.subr.bf16.mxu1 %v4027_v41 }
 0x273   : > { %1811 = vmatprep.mubr.bf16.mxu0 %v4774_v8  ;;  %1852 = vmatprep.mubr.bf16.mxu1 %v4774_v8 }
 0x275   : > { %1782 = vmatpush1.bf16.msra.mxu0 %v4032_v42  ;;  %1823 = vmatpush1.bf16.msra.mxu1 %v4039_v43 }
 0x276   : > { %1783 = vmatprep.subr.bf16.mxu0 %v4046_v44  ;;  %1824 = vmatprep.subr.bf16.mxu1 %v4051_v45  ;;  %v4775_v45 = vld [vmem:[#allocation5_spill] sm:$0xff] }
 0x279   : > { %1784 = vmatpush1.bf16.msra.mxu0 %v4059_v47  ;;  %1825 = vmatpush1.bf16.msra.mxu1 %v4064_v48 }
 0x27a   : > { %1785 = vmatprep.subr.bf16.mxu0 %v4071_v49  ;;  %1826 = vmatprep.subr.bf16.mxu1 %v4078_v50 }
 0x27d   : > { %1786 = vmatpush1.bf16.msra.mxu0 %v4083_v51  ;;  %1827 = vmatpush1.bf16.msra.mxu1 %v4088_v52 }
 0x27e   : > { %1787 = vmatprep.subr.bf16.mxu0 %v4095_v53  ;;  %1828 = vmatprep.subr.bf16.mxu1 %v4102_v54 }
 0x281   : > { %1788 = vmatpush1.bf16.msra.mxu0 %v4110_v56  ;;  %1829 = vmatpush1.bf16.msra.mxu1 %v4115_v57 }
 0x282   : > { %1789 = vmatprep.subr.bf16.mxu0 %v4120_v58  ;;  %1830 = vmatprep.subr.bf16.mxu1 %v4125_v59 }
 0x285   : > { %1790 = vmatpush1.bf16.msra.mxu0 %v4134_v60  ;;  %1831 = vmatpush1.bf16.msra.mxu1 %v4139_v61 }
 0x286   : > { %1791 = vmatprep.subr.bf16.mxu0 %v4144_v62  ;;  %1832 = vmatprep.subr.bf16.mxu1 %v4149_v63 }
 0x289   : > { %1792 = vmatpush1.bf16.msra.mxu0 %v4161_v1  ;;  %1833 = vmatpush1.bf16.msra.mxu1 %v4166_v2 }
 0x28a   : > { %1793 = vmatprep.subr.bf16.mxu0 %v4171_v3  ;;  %1834 = vmatprep.subr.bf16.mxu1 %v4176_v5 }
 0x28d   : > { %1794 = vmatpush1.bf16.msra.mxu0 %v4187_v6  ;;  %1835 = vmatpush1.bf16.msra.mxu1 %v4192_v7 }
 0x28e   : > { %2095 = vmatprep.subr.bf16.mxu0 %v4414_v27  ;;  %2136 = vmatprep.subr.bf16.mxu1 %v4419_v33 }
 0x343   : > { %v1497_v38 = vpop.f32.mrb[24].mxu0  ;;  %v1538_v39 = vpop.f32.mrb[24].mxu1 }
 0x344   : > { %v1545_v40 = vadd.f32 %v1497_v38, %v4257_v34  ;;  %v1547_v41 = vadd.f32 %v1538_v39, %v4260_v46  ;;  %v1499_v42 = vpop.f32.mrb[25].mxu0  ;;  %v1540_v43 = vpop.f32.mrb[25].mxu1  ;;  %v4592_v38 = vld [vmem:[%s4749_s3 + $0xe0] ss:$16 sps:$4 sm:$0xff]   ;;  %v4597_v39 = vld [vmem:[%s4749_s3 + $0xe8] ss:$16 sps:$4 sm:$0xff]  }
 0x345   : > { %v1546_v44 = vadd.f32 %v1499_v42, %v4262_v0  ;;  %v1548_v47 = vadd.f32 %v1540_v43, %v4775_v45  ;;  %v1501_v48 = vpop.f32.mrb[26].mxu0  ;;  %v1542_v49 = vpop.f32.mrb[26].mxu1  ;;  %v4776_v42 = vld [vmem:[#allocation6_spill] sm:$0xff] }
 0x346   : > { %v3371_v50 = vmul.f32 -1.442695, %v1545_v40  ;;  %v1502_v51 = vpop.f32.mrb[27].mxu0  ;;  %v1543_v52 = vpop.f32.mrb[27].mxu1  ;;  %v4778_v49 = vld [vmem:[#allocation8_spill] sm:$0xff] }
 0x347   : > { %v3372_v53 = vmul.f32 -1.442695, %v1546_v44  ;;  %v3373_v54 = vmul.f32 -1.442695, %v1548_v47  ;;  %v4777_v44 = vld [vmem:[#allocation7_spill] sm:$0xff]  ;;  %v4779_v51 = vld [vmem:[#allocation9_spill] sm:$0xff] }
 0x348   : > { %3748 = vpow2.f32 %v3371_v50 }
 0x349   : > { %3750 = vpow2.f32 %v3372_v53 }
 0x34a   : > { %3752 = vpow2.f32 %v3373_v54 }
 0x34b   : > { %3754 = vtanh.f32 %v1547_v41 }
 0x352   : > { %v3749_v56 = vpop.eup %3748 }
 0x353   : > { %v3751_v57 = vpop.eup %3750  ;;  %v1552_v58 = vadd.f32 1.0, %v3749_v56 }
 0x354   : > { %v1558_v59 = vadd.f32 1.0, %v3751_v57  ;;  %v3753_v60 = vpop.eup %3752 }
 0x355   : > { %3756 = vrcp.f32 %v1552_v58  ;;  %v3755_v61 = vpop.eup %3754  ;;  %v1565_v2 = vadd.f32 1.0, %v3753_v60 }
 0x356   : > { %3758 = vrcp.f32 %v1558_v59 }
 0x357   : > { %3760 = vrcp.f32 %v1565_v2 }
 0x35f   : > { %v3757_v62 = vpop.eup %3756 }
 0x360   : > { %v3759_v63 = vpop.eup %3758  ;;  %v1570_v1 = vmul.f32 %v3757_v62, %v3755_v61 }
 0x361   : > { %v1569_v3 = vmul.f32 %v3759_v63, %v4364_v24  ;;  %v3761_v6 = vpop.eup %3760  ;;  %v4558_v24 = vld [vmem:[%s4749_s3 + $0xc4] ss:$16 sps:$4 sm:$0xff]  }
 0x363   : > { %v4405_v5 = vadd.f32 %v1570_v1, %v1569_v3 }
 0x365   : > { %3762 = vtanh.f32 %v4405_v5 }
 0x36f   : > { %v3763_v7 = vpop.eup %3762 }
 0x370   : > { %v1573_v34 = vmul.f32 %v3763_v7, %v3761_v6 }
 0x372   : > { %v1574_v46 = vpack.c.bf16 %v1573_v34, %v1573_v34 }
 0x374   : > { %1576 = vst [vmem:[#allocation3] sm:$0xf] %v1574_v46  ;;  %3374 = vst [vmem:[%s3896_s24 + $0x8] sm:$0xf] %v1574_v46 }
 0x37b   : > { %v1586_v0 = vld [vmem:[#allocation3] sm:$0xf] }
 0x37c   : > { %1812 = vmatmul.mubr.bf16.vlgmr.msra.gmra.mrb[28].mxu0 %v1586_v0  ;;  %1853 = vmatmul.mubr.bf16.vlgmr.msra.gmra.mrb[28].mxu1 %v1586_v0 }
 0x37d   : > { %2127 = vmatprep.mubr.bf16.mxu0 %v4774_v8  ;;  %2168 = vmatprep.mubr.bf16.mxu1 %v4774_v8 }
 0x37e   : > { %2096 = vmatpush1.bf16.msra.mxu0 %v4424_v17  ;;  %2137 = vmatpush1.bf16.msra.mxu1 %v4429_v16 }
 0x37f   : > { %2097 = vmatprep.subr.bf16.mxu0 %v4438_v18  ;;  %2138 = vmatprep.subr.bf16.mxu1 %v4443_v20 }
 0x382   : > { %2098 = vmatpush1.bf16.msra.mxu0 %v4448_v19  ;;  %2139 = vmatpush1.bf16.msra.mxu1 %v4453_v21 }
 0x383   : > { %2099 = vmatprep.subr.bf16.mxu0 %v4462_v4  ;;  %2140 = vmatprep.subr.bf16.mxu1 %v4467_v22 }
 0x386   : > { %2100 = vmatpush1.bf16.msra.mxu0 %v4472_v23  ;;  %2141 = vmatpush1.bf16.msra.mxu1 %v4477_v35 }
 0x387   : > { %2101 = vmatprep.subr.bf16.mxu0 %v4486_v36  ;;  %2142 = vmatprep.subr.bf16.mxu1 %v4491_v11 }
 0x38a   : > { %2102 = vmatpush1.bf16.msra.mxu0 %v4496_v29  ;;  %2143 = vmatpush1.bf16.msra.mxu1 %v4501_v26 }
 0x38b   : > { %2103 = vmatprep.subr.bf16.mxu0 %v4510_v28  ;;  %2144 = vmatprep.subr.bf16.mxu1 %v4515_v30 }
 0x38e   : > { %2104 = vmatpush1.bf16.msra.mxu0 %v4520_v31  ;;  %2145 = vmatpush1.bf16.msra.mxu1 %v4525_v55 }
 0x38f   : > { %2105 = vmatprep.subr.bf16.mxu0 %v4534_v9  ;;  %2146 = vmatprep.subr.bf16.mxu1 %v4539_v13 }
 0x392   : > { %2106 = vmatpush1.bf16.msra.mxu0 %v4544_v37  ;;  %2147 = vmatpush1.bf16.msra.mxu1 %v4549_v12 }
 0x393   : > { %2107 = vmatprep.subr.bf16.mxu0 %v4558_v24  ;;  %2148 = vmatprep.subr.bf16.mxu1 %v4563_v32 }
 0x396   : > { %2108 = vmatpush1.bf16.msra.mxu0 %v4568_v15  ;;  %2149 = vmatpush1.bf16.msra.mxu1 %v4573_v10 }
 0x397   : > { %2109 = vmatprep.subr.bf16.mxu0 %v4580_v14  ;;  %2150 = vmatprep.subr.bf16.mxu1 %v4585_v25 }
 0x39a   : > { %2110 = vmatpush1.bf16.msra.mxu0 %v4592_v38  ;;  %2151 = vmatpush1.bf16.msra.mxu1 %v4597_v39 }
 0x39b   : > { %2411 = vmatprep.subr.bf16.mxu0 %v4414_v27  ;;  %2452 = vmatprep.subr.bf16.mxu1 %v4419_v33 }
 0x44f   : > { %v1813_v40 = vpop.f32.mrb[28].mxu0  ;;  %v1854_v41 = vpop.f32.mrb[28].mxu1 }
 0x450   : > { %v1861_v43 = vadd.f32 %v1813_v40, %v4776_v42  ;;  %v1863_v45 = vadd.f32 %v1854_v41, %v4777_v44  ;;  %v1815_v47 = vpop.f32.mrb[29].mxu0  ;;  %v1856_v48 = vpop.f32.mrb[29].mxu1 }
 0x451   : > { %v1862_v50 = vadd.f32 %v1815_v47, %v4778_v49  ;;  %v1864_v52 = vadd.f32 %v1856_v48, %v4779_v51  ;;  %v1817_v53 = vpop.f32.mrb[30].mxu0  ;;  %v1858_v54 = vpop.f32.mrb[30].mxu1  ;;  %v4780_v48 = vld [vmem:[#allocation10_spill] sm:$0xff] }
 0x452   : > { %v3407_v56 = vmul.f32 -1.442695, %v1861_v43  ;;  %v1818_v57 = vpop.f32.mrb[31].mxu0  ;;  %v1859_v58 = vpop.f32.mrb[31].mxu1  ;;  %v4782_v54 = vld [vmem:[#allocation12_spill] sm:$0xff] }
 0x453   : > { %v3408_v59 = vmul.f32 -1.442695, %v1862_v50  ;;  %v3409_v60 = vmul.f32 -1.442695, %v1864_v52  ;;  %v4781_v50 = vld [vmem:[#allocation11_spill] sm:$0xff]  ;;  %v4783_v57 = vld [vmem:[#allocation13_spill] sm:$0xff] }
 0x454   : > { %3764 = vpow2.f32 %v3407_v56 }
 0x455   : > { %3766 = vpow2.f32 %v3408_v59 }
 0x456   : > { %3768 = vpow2.f32 %v3409_v60 }
 0x457   : > { %3770 = vtanh.f32 %v1863_v45 }
 0x45e   : > { %v3765_v61 = vpop.eup %3764 }
 0x45f   : > { %v3767_v62 = vpop.eup %3766  ;;  %v1868_v63 = vadd.f32 1.0, %v3765_v61 }
 0x460   : > { %v1874_v1 = vadd.f32 1.0, %v3767_v62  ;;  %v3769_v2 = vpop.eup %3768 }
 0x461   : > { %3772 = vrcp.f32 %v1868_v63  ;;  %v3771_v3 = vpop.eup %3770  ;;  %v1881_v46 = vadd.f32 1.0, %v3769_v2 }
 0x462   : > { %3774 = vrcp.f32 %v1874_v1 }
 0x463   : > { %3776 = vrcp.f32 %v1881_v46 }
 0x46b   : > { %v3773_v6 = vpop.eup %3772 }
 0x46c   : > { %v3775_v7 = vpop.eup %3774  ;;  %v1886_v34 = vmul.f32 %v3773_v6, %v3771_v3 }
 0x46d   : > { %v1885_v0 = vmul.f32 %v3775_v7, %v4405_v5  ;;  %v3777_v41 = vpop.eup %3776 }
 0x46f   : > { %v4610_v40 = vadd.f32 %v1886_v34, %v1885_v0 }
 0x471   : > { %3778 = vtanh.f32 %v4610_v40 }
 0x47b   : > { %v3779_v42 = vpop.eup %3778 }
 0x47c   : > { %v1889_v43 = vmul.f32 %v3779_v42, %v3777_v41 }
 0x47e   : > { %v1890_v44 = vpack.c.bf16 %v1889_v43, %v1889_v43 }
 0x480   : > { %1892 = vst [vmem:[#allocation3] sm:$0xf] %v1890_v44  ;;  %3410 = vst [vmem:[%s3896_s24 + $0xc] sm:$0xf] %v1890_v44 }
 0x487   : > { %v1902_v45 = vld [vmem:[#allocation3] sm:$0xf] }
 0x488   : > { %2128 = vmatmul.mubr.bf16.vlgmr.msra.gmra.mrb[32].mxu0 %v1902_v45  ;;  %2169 = vmatmul.mubr.bf16.vlgmr.msra.gmra.mrb[32].mxu1 %v1902_v45 }
 0x489   : > { %2412 = vmatpush1.bf16.msra.mxu0 %v4424_v17  ;;  %2453 = vmatpush1.bf16.msra.mxu1 %v4429_v16 }
 0x48a   : > { %2413 = vmatprep.subr.bf16.mxu0 %v4438_v18  ;;  %2454 = vmatprep.subr.bf16.mxu1 %v4443_v20 }
 0x48b   : > { %2443 = vmatprep.mubr.bf16.mxu0 %v4774_v8  ;;  %2484 = vmatprep.mubr.bf16.mxu1 %v4774_v8 }
 0x48d   : > { %2414 = vmatpush1.bf16.msra.mxu0 %v4448_v19  ;;  %2455 = vmatpush1.bf16.msra.mxu1 %v4453_v21 }
 0x48e   : > { %2415 = vmatprep.subr.bf16.mxu0 %v4462_v4  ;;  %2456 = vmatprep.subr.bf16.mxu1 %v4467_v22 }
 0x491   : > { %2416 = vmatpush1.bf16.msra.mxu0 %v4472_v23  ;;  %2457 = vmatpush1.bf16.msra.mxu1 %v4477_v35 }
 0x492   : > { %2417 = vmatprep.subr.bf16.mxu0 %v4486_v36  ;;  %2458 = vmatprep.subr.bf16.mxu1 %v4491_v11 }
 0x495   : > { %2418 = vmatpush1.bf16.msra.mxu0 %v4496_v29  ;;  %2459 = vmatpush1.bf16.msra.mxu1 %v4501_v26 }
 0x496   : > { %2419 = vmatprep.subr.bf16.mxu0 %v4510_v28  ;;  %2460 = vmatprep.subr.bf16.mxu1 %v4515_v30 }
 0x499   : > { %2420 = vmatpush1.bf16.msra.mxu0 %v4520_v31  ;;  %2461 = vmatpush1.bf16.msra.mxu1 %v4525_v55 }
 0x49a   : > { %2421 = vmatprep.subr.bf16.mxu0 %v4534_v9  ;;  %2462 = vmatprep.subr.bf16.mxu1 %v4539_v13 }
 0x49d   : > { %2422 = vmatpush1.bf16.msra.mxu0 %v4544_v37  ;;  %2463 = vmatpush1.bf16.msra.mxu1 %v4549_v12 }
 0x49e   : > { %2423 = vmatprep.subr.bf16.mxu0 %v4558_v24  ;;  %2464 = vmatprep.subr.bf16.mxu1 %v4563_v32 }
 0x4a1   : > { %2424 = vmatpush1.bf16.msra.mxu0 %v4568_v15  ;;  %2465 = vmatpush1.bf16.msra.mxu1 %v4573_v10 }
 0x4a2   : > { %2425 = vmatprep.subr.bf16.mxu0 %v4580_v14  ;;  %2466 = vmatprep.subr.bf16.mxu1 %v4585_v25 }
 0x4a5   : > { %2426 = vmatpush1.bf16.msra.mxu0 %v4592_v38  ;;  %2467 = vmatpush1.bf16.msra.mxu1 %v4597_v39 }
 0x4a6   : > { %2727 = vmatprep.subr.bf16.mxu0 %v4414_v27  ;;  %2768 = vmatprep.subr.bf16.mxu1 %v4419_v33 }
 0x55b   : > { %v2129_v5 = vpop.f32.mrb[32].mxu0  ;;  %v2170_v47 = vpop.f32.mrb[32].mxu1 }
 0x55c   : > { %v2177_v49 = vadd.f32 %v2129_v5, %v4780_v48  ;;  %v2179_v51 = vadd.f32 %v2170_v47, %v4781_v50  ;;  %v2131_v52 = vpop.f32.mrb[33].mxu0  ;;  %v2172_v53 = vpop.f32.mrb[33].mxu1 }
 0x55d   : > { %v2178_v56 = vadd.f32 %v2131_v52, %v4782_v54  ;;  %v2180_v58 = vadd.f32 %v2172_v53, %v4783_v57  ;;  %v2133_v59 = vpop.f32.mrb[34].mxu0  ;;  %v2174_v60 = vpop.f32.mrb[34].mxu1  ;;  %v4784_v53 = vld [vmem:[#allocation14_spill] sm:$0xff] }
 0x55e   : > { %v3443_v61 = vmul.f32 -1.442695, %v2177_v49  ;;  %v2134_v62 = vpop.f32.mrb[35].mxu0  ;;  %v2175_v63 = vpop.f32.mrb[35].mxu1  ;;  %v4786_v60 = vld [vmem:[#allocation16_spill] sm:$0xff] }
 0x55f   : > { %v3444_v1 = vmul.f32 -1.442695, %v2178_v56  ;;  %v3445_v2 = vmul.f32 -1.442695, %v2180_v58  ;;  %v4785_v56 = vld [vmem:[#allocation15_spill] sm:$0xff]  ;;  %v4787_v62 = vld [vmem:[#allocation17_spill] sm:$0xff] }
 0x560   : > { %3780 = vpow2.f32 %v3443_v61 }
 0x561   : > { %3782 = vpow2.f32 %v3444_v1 }
 0x562   : > { %3784 = vpow2.f32 %v3445_v2 }
 0x563   : > { %3786 = vtanh.f32 %v2179_v51 }
 0x56a   : > { %v3781_v3 = vpop.eup %3780 }
 0x56b   : > { %v3783_v6 = vpop.eup %3782  ;;  %v2184_v7 = vadd.f32 1.0, %v3781_v3 }
 0x56c   : > { %v2190_v34 = vadd.f32 1.0, %v3783_v6  ;;  %v3785_v46 = vpop.eup %3784 }
 0x56d   : > { %3788 = vrcp.f32 %v2184_v7  ;;  %v3787_v0 = vpop.eup %3786  ;;  %v2197_v44 = vadd.f32 1.0, %v3785_v46 }
 0x56e   : > { %3790 = vrcp.f32 %v2190_v34 }
 0x56f   : > { %3792 = vrcp.f32 %v2197_v44 }
 0x577   : > { %v3789_v41 = vpop.eup %3788 }
 0x578   : > { %v3791_v42 = vpop.eup %3790  ;;  %v2202_v43 = vmul.f32 %v3789_v41, %v3787_v0 }
 0x579   : > { %v2201_v45 = vmul.f32 %v3791_v42, %v4610_v40  ;;  %v3793_v47 = vpop.eup %3792 }
 0x57b   : > { %v4653_v5 = vadd.f32 %v2202_v43, %v2201_v45 }
 0x57d   : > { %3794 = vtanh.f32 %v4653_v5 }
 0x587   : > { %v3795_v48 = vpop.eup %3794 }
 0x588   : > { %v2205_v49 = vmul.f32 %v3795_v48, %v3793_v47 }
 0x58a   : > { %v2206_v50 = vpack.c.bf16 %v2205_v49, %v2205_v49 }
 0x58c   : > { %3446 = vst [vmem:[%s3896_s24 + $0x10] sm:$0xf] %v2206_v50  ;;  %2208 = vst [vmem:[#allocation3] sm:$0xf] %v2206_v50 }
 0x593   : > { %v2218_v51 = vld [vmem:[#allocation3] sm:$0xf] }
 0x594   : > { %2444 = vmatmul.mubr.bf16.vlgmr.msra.gmra.mrb[36].mxu0 %v2218_v51  ;;  %2485 = vmatmul.mubr.bf16.vlgmr.msra.gmra.mrb[36].mxu1 %v2218_v51 }
 0x595   : > { %2728 = vmatpush1.bf16.msra.mxu0 %v4424_v17  ;;  %2769 = vmatpush1.bf16.msra.mxu1 %v4429_v16 }
 0x596   : > { %2729 = vmatprep.subr.bf16.mxu0 %v4438_v18  ;;  %2770 = vmatprep.subr.bf16.mxu1 %v4443_v20 }
 0x597   : > { %2759 = vmatprep.mubr.bf16.mxu0 %v4774_v8  ;;  %2800 = vmatprep.mubr.bf16.mxu1 %v4774_v8 }
 0x599   : > { %2730 = vmatpush1.bf16.msra.mxu0 %v4448_v19  ;;  %2771 = vmatpush1.bf16.msra.mxu1 %v4453_v21 }
 0x59a   : > { %2731 = vmatprep.subr.bf16.mxu0 %v4462_v4  ;;  %2772 = vmatprep.subr.bf16.mxu1 %v4467_v22 }
 0x59d   : > { %2732 = vmatpush1.bf16.msra.mxu0 %v4472_v23  ;;  %2773 = vmatpush1.bf16.msra.mxu1 %v4477_v35 }
 0x59e   : > { %2733 = vmatprep.subr.bf16.mxu0 %v4486_v36  ;;  %2774 = vmatprep.subr.bf16.mxu1 %v4491_v11 }
 0x5a1   : > { %2734 = vmatpush1.bf16.msra.mxu0 %v4496_v29  ;;  %2775 = vmatpush1.bf16.msra.mxu1 %v4501_v26 }
 0x5a2   : > { %2735 = vmatprep.subr.bf16.mxu0 %v4510_v28  ;;  %2776 = vmatprep.subr.bf16.mxu1 %v4515_v30 }
 0x5a5   : > { %2736 = vmatpush1.bf16.msra.mxu0 %v4520_v31  ;;  %2777 = vmatpush1.bf16.msra.mxu1 %v4525_v55 }
 0x5a6   : > { %2737 = vmatprep.subr.bf16.mxu0 %v4534_v9  ;;  %2778 = vmatprep.subr.bf16.mxu1 %v4539_v13 }
 0x5a9   : > { %2738 = vmatpush1.bf16.msra.mxu0 %v4544_v37  ;;  %2779 = vmatpush1.bf16.msra.mxu1 %v4549_v12 }
 0x5aa   : > { %2739 = vmatprep.subr.bf16.mxu0 %v4558_v24  ;;  %2780 = vmatprep.subr.bf16.mxu1 %v4563_v32 }
 0x5ad   : > { %2740 = vmatpush1.bf16.msra.mxu0 %v4568_v15  ;;  %2781 = vmatpush1.bf16.msra.mxu1 %v4573_v10 }
 0x5ae   : > { %2741 = vmatprep.subr.bf16.mxu0 %v4580_v14  ;;  %2782 = vmatprep.subr.bf16.mxu1 %v4585_v25 }
 0x5b1   : > { %2742 = vmatpush1.bf16.msra.mxu0 %v4592_v38  ;;  %2783 = vmatpush1.bf16.msra.mxu1 %v4597_v39 }
 0x5b2   : > { %3043 = vmatprep.subr.bf16.mxu0 %v4414_v27  ;;  %3084 = vmatprep.subr.bf16.mxu1 %v4419_v33 }
 0x667   : > { %v2445_v40 = vpop.f32.mrb[36].mxu0  ;;  %v2486_v52 = vpop.f32.mrb[36].mxu1 }
 0x668   : > { %v2493_v54 = vadd.f32 %v2445_v40, %v4784_v53  ;;  %v2495_v57 = vadd.f32 %v2486_v52, %v4785_v56  ;;  %v2447_v58 = vpop.f32.mrb[37].mxu0  ;;  %v2488_v59 = vpop.f32.mrb[37].mxu1 }
 0x669   : > { %v2494_v61 = vadd.f32 %v2447_v58, %v4786_v60  ;;  %v2496_v63 = vadd.f32 %v2488_v59, %v4787_v62  ;;  %v2449_v1 = vpop.f32.mrb[38].mxu0  ;;  %v2490_v2 = vpop.f32.mrb[38].mxu1  ;;  %v4792_v62 = vld [vmem:[#allocation22_spill] sm:$0xff] }
 0x66a   : > { %v3479_v3 = vmul.f32 -1.442695, %v2493_v54  ;;  %v2450_v6 = vpop.f32.mrb[39].mxu0  ;;  %v2491_v7 = vpop.f32.mrb[39].mxu1  ;;  %v4793_v1 = vld [vmem:[#allocation23_spill] sm:$0xff] }
 0x66b   : > { %v3480_v27 = vmul.f32 -1.442695, %v2494_v61  ;;  %v3481_v33 = vmul.f32 -1.442695, %v2496_v63  ;;  %v4794_v7 = vld [vmem:[#allocation24_spill] sm:$0xff] }
 0x66c   : > { %3796 = vpow2.f32 %v3479_v3 }
 0x66d   : > { %3798 = vpow2.f32 %v3480_v27 }
 0x66e   : > { %3800 = vpow2.f32 %v3481_v33  ;;  %v4795_v33 = vld [vmem:[#allocation25_spill] sm:$0xff] }
 0x66f   : > { %3802 = vtanh.f32 %v2495_v57 }
 0x676   : > { %v3797_v34 = vpop.eup %3796 }
 0x677   : > { %v3799_v46 = vpop.eup %3798  ;;  %v2500_v0 = vadd.f32 1.0, %v3797_v34 }
 0x678   : > { %v2506_v41 = vadd.f32 1.0, %v3799_v46  ;;  %v3801_v42 = vpop.eup %3800 }
 0x679   : > { %3804 = vrcp.f32 %v2500_v0  ;;  %v3803_v43 = vpop.eup %3802  ;;  %v2513_v48 = vadd.f32 1.0, %v3801_v42 }
 0x67a   : > { %3806 = vrcp.f32 %v2506_v41 }
 0x67b   : > { %3808 = vrcp.f32 %v2513_v48 }
 0x683   : > { %v3805_v44 = vpop.eup %3804 }
 0x684   : > { %v3807_v45 = vpop.eup %3806  ;;  %v2518_v47 = vmul.f32 %v3805_v44, %v3803_v43 }
 0x685   : > { %v2517_v49 = vmul.f32 %v3807_v45, %v4653_v5  ;;  %v3809_v51 = vpop.eup %3808 }
 0x687   : > { %v4696_v50 = vadd.f32 %v2518_v47, %v2517_v49 }
 0x689   : > { %3810 = vtanh.f32 %v4696_v50 }
 0x693   : > { %v3811_v40 = vpop.eup %3810 }
 0x694   : > { %v2521_v52 = vmul.f32 %v3811_v40, %v3809_v51 }
 0x696   : > { %v2522_v53 = vpack.c.bf16 %v2521_v52, %v2521_v52 }
 0x698   : > { %3482 = vst [vmem:[%s3896_s24 + $0x14] sm:$0xf] %v2522_v53  ;;  %2524 = vst [vmem:[#allocation3] sm:$0xf] %v2522_v53 }
 0x69f   : > { %v2534_v54 = vld [vmem:[#allocation3] sm:$0xf] }
 0x6a0   : > { %2760 = vmatmul.mubr.bf16.vlgmr.msra.gmra.mrb[40].mxu0 %v2534_v54  ;;  %2801 = vmatmul.mubr.bf16.vlgmr.msra.gmra.mrb[40].mxu1 %v2534_v54 }
 0x6a1   : > { %3044 = vmatpush1.bf16.msra.mxu0 %v4424_v17  ;;  %3085 = vmatpush1.bf16.msra.mxu1 %v4429_v16  ;;  %v4788_v16 = vld [vmem:[#allocation18_spill] sm:$0xff] }
 0x6a2   : > { %3045 = vmatprep.subr.bf16.mxu0 %v4438_v18  ;;  %3086 = vmatprep.subr.bf16.mxu1 %v4443_v20  ;;  %v4789_v20 = vld [vmem:[#allocation19_spill] sm:$0xff] }
 0x6a3   : > { %3075 = vmatprep.mubr.bf16.mxu0 %v4774_v8  ;;  %3116 = vmatprep.mubr.bf16.mxu1 %v4774_v8 }
 0x6a5   : > { %3046 = vmatpush1.bf16.msra.mxu0 %v4448_v19  ;;  %3087 = vmatpush1.bf16.msra.mxu1 %v4453_v21 }
 0x6a6   : > { %3047 = vmatprep.subr.bf16.mxu0 %v4462_v4  ;;  %3088 = vmatprep.subr.bf16.mxu1 %v4467_v22  ;;  %v4790_v22 = vld [vmem:[#allocation20_spill] sm:$0xff] }
 0x6a9   : > { %3048 = vmatpush1.bf16.msra.mxu0 %v4472_v23  ;;  %3089 = vmatpush1.bf16.msra.mxu1 %v4477_v35  ;;  %v4791_v35 = vld [vmem:[#allocation21_spill] sm:$0xff] }
 0x6aa   : > { %3049 = vmatprep.subr.bf16.mxu0 %v4486_v36  ;;  %3090 = vmatprep.subr.bf16.mxu1 %v4491_v11 }
 0x6ad   : > { %3050 = vmatpush1.bf16.msra.mxu0 %v4496_v29  ;;  %3091 = vmatpush1.bf16.msra.mxu1 %v4501_v26 }
 0x6ae   : > { %3051 = vmatprep.subr.bf16.mxu0 %v4510_v28  ;;  %3092 = vmatprep.subr.bf16.mxu1 %v4515_v30 }
 0x6b1   : > { %3052 = vmatpush1.bf16.msra.mxu0 %v4520_v31  ;;  %3093 = vmatpush1.bf16.msra.mxu1 %v4525_v55 }
 0x6b2   : > { %3053 = vmatprep.subr.bf16.mxu0 %v4534_v9  ;;  %3094 = vmatprep.subr.bf16.mxu1 %v4539_v13 }
 0x6b5   : > { %3054 = vmatpush1.bf16.msra.mxu0 %v4544_v37  ;;  %3095 = vmatpush1.bf16.msra.mxu1 %v4549_v12 }
 0x6b6   : > { %3055 = vmatprep.subr.bf16.mxu0 %v4558_v24  ;;  %3096 = vmatprep.subr.bf16.mxu1 %v4563_v32 }
 0x6b9   : > { %3056 = vmatpush1.bf16.msra.mxu0 %v4568_v15  ;;  %3097 = vmatpush1.bf16.msra.mxu1 %v4573_v10 }
 0x6ba   : > { %3057 = vmatprep.subr.bf16.mxu0 %v4580_v14  ;;  %3098 = vmatprep.subr.bf16.mxu1 %v4585_v25 }
 0x6bd   : > { %3058 = vmatpush1.bf16.msra.mxu0 %v4592_v38  ;;  %3099 = vmatpush1.bf16.msra.mxu1 %v4597_v39 }
 0x773   : > { %v2761_v8 = vpop.f32.mrb[40].mxu0  ;;  %v2802_v17 = vpop.f32.mrb[40].mxu1 }
 0x774   : > { %v2809_v18 = vadd.f32 %v2761_v8, %v4788_v16  ;;  %v2811_v19 = vadd.f32 %v2802_v17, %v4789_v20  ;;  %v2763_v21 = vpop.f32.mrb[41].mxu0  ;;  %v2804_v4 = vpop.f32.mrb[41].mxu1 }
 0x775   : > { %v2810_v23 = vadd.f32 %v2763_v21, %v4790_v22  ;;  %v2812_v36 = vadd.f32 %v2804_v4, %v4791_v35  ;;  %v2765_v11 = vpop.f32.mrb[42].mxu0  ;;  %v2806_v29 = vpop.f32.mrb[42].mxu1 }
 0x776   : > { %v3515_v26 = vmul.f32 -1.442695, %v2809_v18  ;;  %v2766_v28 = vpop.f32.mrb[43].mxu0  ;;  %v2807_v30 = vpop.f32.mrb[43].mxu1 }
 0x777   : > { %v3516_v31 = vmul.f32 -1.442695, %v2810_v23  ;;  %v3517_v55 = vmul.f32 -1.442695, %v2812_v36 }
 0x778   : > { %3812 = vpow2.f32 %v3515_v26 }
 0x779   : > { %3814 = vpow2.f32 %v3516_v31 }
 0x77a   : > { %3816 = vpow2.f32 %v3517_v55 }
 0x77b   : > { %3818 = vtanh.f32 %v2811_v19 }
 0x782   : > { %v3813_v9 = vpop.eup %3812 }
 0x783   : > { %v3815_v13 = vpop.eup %3814  ;;  %v2816_v37 = vadd.f32 1.0, %v3813_v9 }
 0x784   : > { %v2822_v12 = vadd.f32 1.0, %v3815_v13  ;;  %v3817_v24 = vpop.eup %3816 }
 0x785   : > { %3820 = vrcp.f32 %v2816_v37  ;;  %v3819_v32 = vpop.eup %3818  ;;  %v2829_v25 = vadd.f32 1.0, %v3817_v24 }
 0x786   : > { %3822 = vrcp.f32 %v2822_v12 }
 0x787   : > { %3824 = vrcp.f32 %v2829_v25 }
 0x78f   : > { %v3821_v15 = vpop.eup %3820 }
 0x790   : > { %v3823_v10 = vpop.eup %3822  ;;  %v2834_v14 = vmul.f32 %v3821_v15, %v3819_v32 }
 0x791   : > { %v2833_v38 = vmul.f32 %v3823_v10, %v4696_v50  ;;  %v3825_v5 = vpop.eup %3824 }
 0x793   : > { %v2835_v39 = vadd.f32 %v2834_v14, %v2833_v38 }
 0x795   : > { %3826 = vtanh.f32 %v2835_v39 }
 0x79f   : > { %v3827_v56 = vpop.eup %3826 }
 0x7a0   : > { %v2837_v57 = vmul.f32 %v3827_v56, %v3825_v5 }
 0x7a2   : > { %v2838_v58 = vpack.c.bf16 %v2837_v57, %v2837_v57 }
 0x7a4   : > { %3518 = vst [vmem:[%s3896_s24 + $0x18] sm:$0xf] %v2838_v58  ;;  %2840 = vst [vmem:[#allocation3] sm:$0xf] %v2838_v58 }
 0x7ab   : > { %v2850_v59 = vld [vmem:[#allocation3] sm:$0xf] }
 0x7ac   : > { %3076 = vmatmul.mubr.bf16.vlgmr.msra.gmra.mrb[44].mxu0 %v2850_v59  ;;  %3117 = vmatmul.mubr.bf16.vlgmr.msra.gmra.mrb[44].mxu1 %v2850_v59 }
 0x87f   : > { %v3077_v60 = vpop.f32.mrb[44].mxu0  ;;  %v3118_v61 = vpop.f32.mrb[44].mxu1 }
 0x880   : > { %v3125_v63 = vadd.f32 %v3077_v60, %v4792_v62  ;;  %v3127_v2 = vadd.f32 %v3118_v61, %v4793_v1  ;;  %v3079_v3 = vpop.f32.mrb[45].mxu0  ;;  %v3120_v6 = vpop.f32.mrb[45].mxu1 }
 0x881   : > { %v3126_v27 = vadd.f32 %v3079_v3, %v4794_v7  ;;  %v3128_v34 = vadd.f32 %v3120_v6, %v4795_v33  ;;  %v3081_v46 = vpop.f32.mrb[46].mxu0  ;;  %v3122_v0 = vpop.f32.mrb[46].mxu1 }
 0x882   : > { %v3551_v41 = vmul.f32 -1.442695, %v3125_v63  ;;  %v3082_v42 = vpop.f32.mrb[47].mxu0  ;;  %v3123_v43 = vpop.f32.mrb[47].mxu1 }
 0x883   : > { %v3552_v44 = vmul.f32 -1.442695, %v3126_v27  ;;  %v3553_v45 = vmul.f32 -1.442695, %v3128_v34 }
 0x884   : > { %3828 = vpow2.f32 %v3551_v41 }
 0x885   : > { %3830 = vpow2.f32 %v3552_v44 }
 0x886   : > { %3832 = vpow2.f32 %v3553_v45 }
 0x887   : > { %3834 = vtanh.f32 %v3127_v2 }
 0x88e   : > { %v3829_v47 = vpop.eup %3828 }
 0x88f   : > { %v3831_v48 = vpop.eup %3830  ;;  %v3132_v49 = vadd.f32 1.0, %v3829_v47 }
 0x890   : > { %v3138_v50 = vadd.f32 1.0, %v3831_v48  ;;  %v3833_v51 = vpop.eup %3832 }
 0x891   : > { %3836 = vrcp.f32 %v3132_v49  ;;  %v3835_v40 = vpop.eup %3834  ;;  %v3145_v8 = vadd.f32 1.0, %v3833_v51 }
 0x892   : > { %3838 = vrcp.f32 %v3138_v50 }
 0x893   : > { %3840 = vrcp.f32 %v3145_v8 }
 0x89b   : > { %v3837_v52 = vpop.eup %3836 }
 0x89c   : > { %v3839_v53 = vpop.eup %3838  ;;  %v3150_v54 = vmul.f32 %v3837_v52, %v3835_v40 }
 0x89d   : > { %v3149_v17 = vmul.f32 %v3839_v53, %v2835_v39  ;;  %v3841_v18 = vpop.eup %3840 }
 0x89f   : > { %v3151_v16 = vadd.f32 %v3150_v54, %v3149_v17 }
 0x8a1   : > { %3842 = vtanh.f32 %v3151_v16  ;;  %3155 = vst [vmem:[#allocation4] sm:$0xff] %v3151_v16 }
 0x8ab   : > { %v3843_v20 = vpop.eup %3842 }
 0x8ac   : > { %v3153_v19 = vmul.f32 %v3843_v20, %v3841_v18 }
 0x8ae   : > { %v3154_v21 = vpack.c.bf16 %v3153_v19, %v3153_v19 }
 0x8b0   : > { %3156 = vst [vmem:[#allocation3] sm:$0xf] %v3154_v21  ;;  %3554 = vst [vmem:[%s3896_s24 + $0x1c] sm:$0xf] %v3154_v21 }
 0x8b1 PF: > { %s14_s15 = sadd.s32 1, %s3850_s15  }
 0x8b2   : > { %p11_p5 = scmp.ge.s32.totalorder %s14_s15, 4  }
 0x8b4   :  { %13 = sbr.rel (!%p11_p5) target bundleno = 1 (0x1), region = 85 }

</bundles_post_ra>
